<compile_context>
chip_gen: v5e
topology: v5e:2x2
jax: 0.10.0
libtpu: 0.0.40
codegen_flags: <defaults>
</compile_context>

<pallas_src>
import functools

import jax
import jax.numpy as jnp
from jax.experimental import pallas as pl
from jax.experimental.pallas import tpu as pltpu


def _dot_t(a, b):
    # a @ b.T with f32 accumulation (contract last dim of a with last dim of b).
    return jax.lax.dot_general(
        a, b, dimension_numbers=(((1,), (1,)), ((), ())),
        preferred_element_type=jnp.float32)


def gqa_kernel(xq_ref, xk_ref, xv_ref,
               wq_ref, wk_ref, wv_ref,
               gamma_ref, beta_ref,
               wo_ref, bo_ref,
               o_ref,
               ctx_ref, kbuf_ref, vbuf_ref,
               *, kv_heads, head_dim, eps):
    # K / V projections only depend on the batch index (grid axis 0): compute
    # them at the first query tile of each batch and cache in VMEM scratch.
    @pl.when(pl.program_id(1) == 0)
    def _():
        kbuf_ref[...] = _dot_t(xk_ref[0], wk_ref[...]).astype(jnp.bfloat16)
        vbuf_ref[...] = _dot_t(xv_ref[0], wv_ref[...]).astype(jnp.bfloat16)

    # Q projection (PyTorch Linear: x @ W.T).  Wq was pre-reduced over the
    # group axis and pre-scaled by 1/d in the wrapper, so q is already the
    # group-summed, fully scaled query of shape (tN, Ekv).
    q = _dot_t(xq_ref[0], wq_ref[...]).astype(jnp.bfloat16)   # (tN, Ekv)
    k = kbuf_ref[...]                                          # (S,  Ekv)
    v = vbuf_ref[...]                                          # (S,  Ekv)

    d = head_dim
    for h in range(kv_heads):
        q_h = q[:, h * d:(h + 1) * d]                  # (tN, d)
        k_h = k[:, h * d:(h + 1) * d]                  # (S,  d)
        v_h = v[:, h * d:(h + 1) * d]                  # (S,  d)

        sim = _dot_t(q_h, k_h)                         # (tN, S) f32; scale folded in
        m = jnp.max(sim, axis=-1, keepdims=True)
        e = jnp.exp(sim - m)                           # f32 (EUP)
        denom = jnp.sum(e, axis=-1, keepdims=True)     # (tN, 1) f32
        num = jnp.dot(e.astype(jnp.bfloat16), v_h,
                      preferred_element_type=jnp.float32)   # (tN, d) f32
        # Fused softmax normalization: (e @ v) * 1/rowsum, reciprocal on the EUP.
        ctx_ref[:, h * d:(h + 1) * d] = num * pl.reciprocal(denom, approx=True)

    # LayerNorm over kv_embed_dim, biased variance (PyTorch semantics), f32 math.
    x = ctx_ref[...]                                   # (tN, Ekv) f32
    mean = jnp.mean(x, axis=-1, keepdims=True)
    var = jnp.mean((x - mean) ** 2, axis=-1, keepdims=True)
    xn = (x - mean) * jax.lax.rsqrt(var + eps)
    xn = xn * gamma_ref[...] + beta_ref[...]           # (1, Ekv) broadcasts

    out = _dot_t(xn.astype(jnp.bfloat16), wo_ref[...]) + bo_ref[...]   # (tN, E) f32
    o_ref[0] = out.astype(o_ref.dtype)


def multihead_gqa_forward(query, key, value, params, *,
                          query_heads, kv_heads, eps=1e-5):
    B, N, E = query.shape
    S = key.shape[1]
    head_dim = E // query_heads
    g = query_heads // kv_heads
    Ekv = head_dim * kv_heads

    # Fold the group-sum and both 1/sqrt(d) scale factors into Wq.
    wq_reduced = (params["wq"].reshape(kv_heads, g, head_dim, E).sum(axis=1)
                  .reshape(Ekv, E)) / float(head_dim)

    # bf16 copies for MXU inputs; LayerNorm / bias params stay f32.
    bf = jnp.bfloat16
    q_in = query.astype(bf)
    k_in = key.astype(bf)
    v_in = value.astype(bf)
    wq_b = wq_reduced.astype(bf)
    wk_b = params["wk"].astype(bf)
    wv_b = params["wv"].astype(bf)
    wo_b = params["wo"].astype(bf)
    gamma2 = params["gamma"].reshape(1, Ekv).astype(jnp.float32)
    beta2 = params["beta"].reshape(1, Ekv).astype(jnp.float32)
    bo2 = params["bo"].reshape(1, E).astype(jnp.float32)

    # Tile the query sequence so per-step VMEM stays bounded and the grid has
    # enough steps for pipelining.
    tN = N if N <= 128 else 128
    assert N % tN == 0, "sequence length must be a multiple of the N tile"
    n_tiles = N // tN

    kernel = functools.partial(
        gqa_kernel, kv_heads=kv_heads, head_dim=head_dim, eps=eps)

    flops = B * (2 * N * E * Ekv                      # q proj (group-reduced)
                 + 4 * S * E * Ekv                    # k, v proj (once per batch)
                 + kv_heads * 4 * N * S * head_dim    # q@k.T and attn@v
                 + 2 * N * Ekv * E)                   # out proj
    bytes_accessed = (2 * (B * N * E + 2 * B * S * E)      # bf16 activations
                      + 2 * (3 * Ekv * E + E * Ekv)        # bf16 weights
                      + 4 * (2 * Ekv + E)                  # f32 LN / bias params
                      + 4 * B * N * E)                     # f32 output
    cost = pl.CostEstimate(flops=flops,
                           transcendentals=B * kv_heads * N * S,
                           bytes_accessed=bytes_accessed)

    return pl.pallas_call(
        kernel,
        out_shape=jax.ShapeDtypeStruct((B, N, E), jnp.float32),
        grid=(B, n_tiles),
        in_specs=[
            pl.BlockSpec((1, tN, E), lambda b, i: (b, i, 0)),   # query tile
            pl.BlockSpec((1, S, E), lambda b, i: (b, 0, 0)),    # key (full S)
            pl.BlockSpec((1, S, E), lambda b, i: (b, 0, 0)),    # value (full S)
            pl.BlockSpec((Ekv, E), lambda b, i: (0, 0)),        # Wq (group-reduced)
            pl.BlockSpec((Ekv, E), lambda b, i: (0, 0)),        # Wk
            pl.BlockSpec((Ekv, E), lambda b, i: (0, 0)),        # Wv
            pl.BlockSpec((1, Ekv), lambda b, i: (0, 0)),        # LN gamma
            pl.BlockSpec((1, Ekv), lambda b, i: (0, 0)),        # LN beta
            pl.BlockSpec((E, Ekv), lambda b, i: (0, 0)),        # Wo
            pl.BlockSpec((1, E), lambda b, i: (0, 0)),          # bo
        ],
        out_specs=pl.BlockSpec((1, tN, E), lambda b, i: (b, i, 0)),
        scratch_shapes=[pltpu.VMEM((tN, Ekv), jnp.float32),     # per-head context
                        pltpu.VMEM((S, Ekv), jnp.bfloat16),     # cached K proj
                        pltpu.VMEM((S, Ekv), jnp.bfloat16)],    # cached V proj
        compiler_params=pltpu.CompilerParams(
            dimension_semantics=("parallel", "arbitrary")),
        cost_estimate=cost,
    )(q_in, k_in, v_in, wq_b, wk_b, wv_b, gamma2, beta2, wo_b, bo2)


def reference_forward(query, key, value, params, *, query_heads, kv_heads, eps=1e-5):
    """Pure-JAX f32 re-implementation of the PyTorch module (for verification)."""
    B, N, E = query.shape
    S = key.shape[1]
    d = E // query_heads
    g = query_heads // kv_heads

    q = query @ params["wq"].T
    k = key @ params["wk"].T
    v = value @ params["wv"].T

    q = q.reshape(B, N, query_heads, d).transpose(0, 2, 1, 3)   # b h n d
    k = k.reshape(B, S, kv_heads, d).transpose(0, 2, 1, 3)      # b h s d
    v = v.reshape(B, S, kv_heads, d).transpose(0, 2, 1, 3)      # b h s d

    scale = d ** 0.5
    q = q / scale
    if g > 1:
        # 'b (h g) n d' with h outer, g inner; the reference einsum sums over g.
        q = q.reshape(B, kv_heads, g, N, d).sum(axis=2)          # b h n d
    sim = jnp.einsum("bhnd,bhsd->bhns", q, k) / scale
    attn = jax.nn.softmax(sim, axis=-1)
    out = jnp.einsum("bhns,bhsd->bhnd", attn, v)
    x = out.transpose(0, 2, 1, 3).reshape(B, N, kv_heads * d)

    mean = jnp.mean(x, axis=-1, keepdims=True)
    var = jnp.mean((x - mean) ** 2, axis=-1, keepdims=True)
    x = (x - mean) / jnp.sqrt(var + eps)
    x = x * params["gamma"] + params["beta"]
    return x @ params["wo"].T + params["bo"]


if __name__ == "__main__":
    # head_dim = E / query_heads must be a multiple of 8 and <= 128.
    # N = 256 gives two query tiles, exercising the per-batch K/V cache path.
    B, N, S, E = 2, 256, 128, 128
    query_heads, kv_heads = 4, 2
    head_dim = E // query_heads      # 32
    Ekv = head_dim * kv_heads        # 64

    root = jax.random.PRNGKey(0)
    ks = jax.random.split(root, 10)

    def xavier_normal(k, shape, gain=1.0):
        fan_out, fan_in = shape
        std = gain * (2.0 / (fan_in + fan_out)) ** 0.5
        return std * jax.random.normal(k, shape, jnp.float32)

    params = dict(
        wq=xavier_normal(ks[0], (E, E)),
        wk=xavier_normal(ks[1], (Ekv, E)),
        wv=xavier_normal(ks[2], (Ekv, E)),                       # gamma_init = 1.0
        gamma=1.0 + 0.1 * jax.random.normal(ks[3], (Ekv,), jnp.float32),
        beta=0.1 * jax.random.normal(ks[4], (Ekv,), jnp.float32),
        wo=xavier_normal(ks[5], (E, Ekv)),                       # gamma_init = 1.0
        bo=0.1 * jax.random.normal(ks[6], (E,), jnp.float32),
    )

    query = jax.random.normal(ks[7], (B, N, E), jnp.float32)
    key = jax.random.normal(ks[8], (B, S, E), jnp.float32)
    value = jax.random.normal(ks[9], (B, S, E), jnp.float32)

    out = multihead_gqa_forward(query, key, value, params,
                                query_heads=query_heads, kv_heads=kv_heads)
    out = jax.block_until_ready(out)

    ref = reference_forward(query, key, value, params,
                            query_heads=query_heads, kv_heads=kv_heads)
    assert out.shape == (B, N, E)
    err = float(jnp.max(jnp.abs(out - ref)))
    assert jnp.allclose(out, ref, atol=5e-2, rtol=5e-2), f"max abs err {err}"
    print("KERNEL_OK")
</pallas_src>

<mosaic_0001>
module attributes {stable_mosaic.version = 11 : i64} {
  func.func @gqa_kernel(%arg0: i32, %arg1: i32, %arg2: memref<1x128x128xbf16, #tpu.memory_space<vmem>>, %arg3: memref<1x128x128xbf16, #tpu.memory_space<vmem>>, %arg4: memref<1x128x128xbf16, #tpu.memory_space<vmem>>, %arg5: memref<64x128xbf16, #tpu.memory_space<vmem>>, %arg6: memref<64x128xbf16, #tpu.memory_space<vmem>>, %arg7: memref<64x128xbf16, #tpu.memory_space<vmem>>, %arg8: memref<1x64xf32, #tpu.memory_space<vmem>>, %arg9: memref<1x64xf32, #tpu.memory_space<vmem>>, %arg10: memref<128x64xbf16, #tpu.memory_space<vmem>>, %arg11: memref<1x128xf32, #tpu.memory_space<vmem>>, %arg12: memref<1x128x128xf32, #tpu.memory_space<vmem>>, %arg13: memref<128x64xf32, #tpu.memory_space<vmem>>, %arg14: memref<128x64xbf16, #tpu.memory_space<vmem>>, %arg15: memref<128x64xbf16, #tpu.memory_space<vmem>>) attributes {dimension_semantics = [#tpu.dimension_semantics<parallel>, #tpu.dimension_semantics<arbitrary>], iteration_bounds = array<i64: 2, 2>, scalar_prefetch = 0 : i64, scratch_operands = 3 : i64, tpu.core_type = #tpu.core_type<tc>, window_params = [{transform_indices = @transform_0, window_bounds = array<i64: 1, 128, 128>}, {transform_indices = @transform_1, window_bounds = array<i64: 1, 128, 128>}, {transform_indices = @transform_2, window_bounds = array<i64: 1, 128, 128>}, {pipeline_mode = #tpu.pipeline_mode<synchronous>, transform_indices = @transform_3, window_bounds = array<i64: 64, 128>}, {pipeline_mode = #tpu.pipeline_mode<synchronous>, transform_indices = @transform_4, window_bounds = array<i64: 64, 128>}, {pipeline_mode = #tpu.pipeline_mode<synchronous>, transform_indices = @transform_5, window_bounds = array<i64: 64, 128>}, {pipeline_mode = #tpu.pipeline_mode<synchronous>, transform_indices = @transform_6, window_bounds = array<i64: 1, 64>}, {pipeline_mode = #tpu.pipeline_mode<synchronous>, transform_indices = @transform_7, window_bounds = array<i64: 1, 64>}, {pipeline_mode = #tpu.pipeline_mode<synchronous>, transform_indices = @transform_8, window_bounds = array<i64: 128, 64>}, {pipeline_mode = #tpu.pipeline_mode<synchronous>, transform_indices = @transform_9, window_bounds = array<i64: 1, 128>}, {transform_indices = @transform_10, window_bounds = array<i64: 1, 128, 128>}]} {
    %c0_i32 = arith.constant 0 : i32
    %0 = arith.cmpi eq, %arg1, %c0_i32 : i32
    %1 = arith.extui %0 : i1 to i32
    %c0_i32_0 = arith.constant 0 : i32
    %2 = arith.cmpi ne, %1, %c0_i32_0 : i32
    scf.if %2 {
      %c0_39 = arith.constant 0 : index
      %c0_40 = arith.constant 0 : index
      %c0_41 = arith.constant 0 : index
      %78 = vector.load %arg3[%c0_39, %c0_40, %c0_41] : memref<1x128x128xbf16, #tpu.memory_space<vmem>>, vector<1x128x128xbf16>
      %79 = vector.shape_cast %78 : vector<1x128x128xbf16> to vector<128x128xbf16>
      %c0_42 = arith.constant 0 : index
      %c0_43 = arith.constant 0 : index
      %80 = vector.load %arg6[%c0_42, %c0_43] : memref<64x128xbf16, #tpu.memory_space<vmem>>, vector<64x128xbf16>
      %cst_44 = arith.constant dense<0.000000e+00> : vector<128x64xf32>
      %81 = tpu.matmul %79, %80, %cst_44 {dimension_numbers = #tpu.dot_dimension_numbers<[1], [1], [0], [0], [0, 0, 1, 0], [], []>} : vector<128x128xbf16>, vector<64x128xbf16>, vector<128x64xf32> -> vector<128x64xf32>
      %82 = arith.truncf %81 : vector<128x64xf32> to vector<128x64xbf16>
      %c0_45 = arith.constant 0 : index
      %c0_46 = arith.constant 0 : index
      %83 = vector.load %arg14[%c0_45, %c0_46] : memref<128x64xbf16, #tpu.memory_space<vmem>>, vector<128x64xbf16>
      tpu.vector_store %arg14[%c0_45, %c0_46], %82 {strides = array<i32>} : memref<128x64xbf16, #tpu.memory_space<vmem>>, vector<128x64xbf16>,
      %c0_47 = arith.constant 0 : index
      %c0_48 = arith.constant 0 : index
      %c0_49 = arith.constant 0 : index
      %84 = vector.load %arg4[%c0_47, %c0_48, %c0_49] : memref<1x128x128xbf16, #tpu.memory_space<vmem>>, vector<1x128x128xbf16>
      %85 = vector.shape_cast %84 : vector<1x128x128xbf16> to vector<128x128xbf16>
      %c0_50 = arith.constant 0 : index
      %c0_51 = arith.constant 0 : index
      %86 = vector.load %arg7[%c0_50, %c0_51] : memref<64x128xbf16, #tpu.memory_space<vmem>>, vector<64x128xbf16>
      %cst_52 = arith.constant dense<0.000000e+00> : vector<128x64xf32>
      %87 = tpu.matmul %85, %86, %cst_52 {dimension_numbers = #tpu.dot_dimension_numbers<[1], [1], [0], [0], [0, 0, 1, 0], [], []>} : vector<128x128xbf16>, vector<64x128xbf16>, vector<128x64xf32> -> vector<128x64xf32>
      %88 = arith.truncf %87 : vector<128x64xf32> to vector<128x64xbf16>
      %c0_53 = arith.constant 0 : index
      %c0_54 = arith.constant 0 : index
      %89 = vector.load %arg15[%c0_53, %c0_54] : memref<128x64xbf16, #tpu.memory_space<vmem>>, vector<128x64xbf16>
      tpu.vector_store %arg15[%c0_53, %c0_54], %88 {strides = array<i32>} : memref<128x64xbf16, #tpu.memory_space<vmem>>, vector<128x64xbf16>,
    } else {
    }
    %c0 = arith.constant 0 : index
    %c0_1 = arith.constant 0 : index
    %c0_2 = arith.constant 0 : index
    %3 = vector.load %arg2[%c0, %c0_1, %c0_2] : memref<1x128x128xbf16, #tpu.memory_space<vmem>>, vector<1x128x128xbf16>
    %4 = vector.shape_cast %3 : vector<1x128x128xbf16> to vector<128x128xbf16>
    %c0_3 = arith.constant 0 : index
    %c0_4 = arith.constant 0 : index
    %5 = vector.load %arg5[%c0_3, %c0_4] : memref<64x128xbf16, #tpu.memory_space<vmem>>, vector<64x128xbf16>
    %cst = arith.constant dense<0.000000e+00> : vector<128x64xf32>
    %6 = tpu.matmul %4, %5, %cst {dimension_numbers = #tpu.dot_dimension_numbers<[1], [1], [0], [0], [0, 0, 1, 0], [], []>} : vector<128x128xbf16>, vector<64x128xbf16>, vector<128x64xf32> -> vector<128x64xf32>
    %7 = arith.truncf %6 : vector<128x64xf32> to vector<128x64xbf16>
    %c0_5 = arith.constant 0 : index
    %c0_6 = arith.constant 0 : index
    %8 = vector.load %arg14[%c0_5, %c0_6] : memref<128x64xbf16, #tpu.memory_space<vmem>>, vector<128x64xbf16>
    %c0_7 = arith.constant 0 : index
    %c0_8 = arith.constant 0 : index
    %9 = vector.load %arg15[%c0_7, %c0_8] : memref<128x64xbf16, #tpu.memory_space<vmem>>, vector<128x64xbf16>
    %10 = vector.extract_strided_slice %7 {offsets = [0, 0], sizes = [128, 32], strides = [1, 1]} : vector<128x64xbf16> to vector<128x32xbf16>
    %11 = vector.extract_strided_slice %8 {offsets = [0, 0], sizes = [128, 32], strides = [1, 1]} : vector<128x64xbf16> to vector<128x32xbf16>
    %12 = vector.extract_strided_slice %9 {offsets = [0, 0], sizes = [128, 32], strides = [1, 1]} : vector<128x64xbf16> to vector<128x32xbf16>
    %cst_9 = arith.constant dense<0.000000e+00> : vector<128x128xf32>
    %13 = tpu.matmul %10, %11, %cst_9 {dimension_numbers = #tpu.dot_dimension_numbers<[1], [1], [0], [0], [0, 0, 1, 0], [], []>} : vector<128x32xbf16>, vector<128x32xbf16>, vector<128x128xf32> -> vector<128x128xf32>
    %cst_10 = arith.constant dense<0xFF800000> : vector<128xf32>
    %14 = vector.multi_reduction <maximumf>, %13, %cst_10 [1] : vector<128x128xf32> to vector<128xf32>
    %15 = vector.shape_cast %14 : vector<128xf32> to vector<128x1xf32>
    %16 = vector.broadcast %15 : vector<128x1xf32> to vector<128x128xf32>
    %17 = arith.subf %13, %16 : vector<128x128xf32>
    %18 = math.exp %17 : vector<128x128xf32>
    %cst_11 = arith.constant dense<0.000000e+00> : vector<128xf32>
    %19 = vector.multi_reduction <add>, %18, %cst_11 [1] : vector<128x128xf32> to vector<128xf32>
    %20 = vector.shape_cast %19 : vector<128xf32> to vector<128x1xf32>
    %21 = arith.truncf %18 : vector<128x128xf32> to vector<128x128xbf16>
    %cst_12 = arith.constant dense<0.000000e+00> : vector<128x32xf32>
    %22 = tpu.matmul %21, %12, %cst_12 {dimension_numbers = #tpu.dot_dimension_numbers<[1], [0], [0], [1], [0, 0, 1, 1], [], []>} : vector<128x128xbf16>, vector<128x32xbf16>, vector<128x32xf32> -> vector<128x32xf32>
    %23 = tpu.reciprocal %20 {approx = true} : vector<128x1xf32> -> vector<128x1xf32>
    %24 = vector.broadcast %23 : vector<128x1xf32> to vector<128x32xf32>
    %25 = arith.mulf %22, %24 : vector<128x32xf32>
    %c0_13 = arith.constant 0 : index
    %c0_14 = arith.constant 0 : index
    %26 = vector.load %arg13[%c0_13, %c0_14] : memref<128x64xf32, #tpu.memory_space<vmem>>, vector<128x32xf32>
    tpu.vector_store %arg13[%c0_13, %c0_14], %25 {strides = array<i32>} : memref<128x64xf32, #tpu.memory_space<vmem>>, vector<128x32xf32>,
    %27 = vector.extract_strided_slice %7 {offsets = [0, 32], sizes = [128, 32], strides = [1, 1]} : vector<128x64xbf16> to vector<128x32xbf16>
    %28 = vector.extract_strided_slice %8 {offsets = [0, 32], sizes = [128, 32], strides = [1, 1]} : vector<128x64xbf16> to vector<128x32xbf16>
    %29 = vector.extract_strided_slice %9 {offsets = [0, 32], sizes = [128, 32], strides = [1, 1]} : vector<128x64xbf16> to vector<128x32xbf16>
    %cst_15 = arith.constant dense<0.000000e+00> : vector<128x128xf32>
    %30 = tpu.matmul %27, %28, %cst_15 {dimension_numbers = #tpu.dot_dimension_numbers<[1], [1], [0], [0], [0, 0, 1, 0], [], []>} : vector<128x32xbf16>, vector<128x32xbf16>, vector<128x128xf32> -> vector<128x128xf32>
    %cst_16 = arith.constant dense<0xFF800000> : vector<128xf32>
    %31 = vector.multi_reduction <maximumf>, %30, %cst_16 [1] : vector<128x128xf32> to vector<128xf32>
    %32 = vector.shape_cast %31 : vector<128xf32> to vector<128x1xf32>
    %33 = vector.broadcast %32 : vector<128x1xf32> to vector<128x128xf32>
    %34 = arith.subf %30, %33 : vector<128x128xf32>
    %35 = math.exp %34 : vector<128x128xf32>
    %cst_17 = arith.constant dense<0.000000e+00> : vector<128xf32>
    %36 = vector.multi_reduction <add>, %35, %cst_17 [1] : vector<128x128xf32> to vector<128xf32>
    %37 = vector.shape_cast %36 : vector<128xf32> to vector<128x1xf32>
    %38 = arith.truncf %35 : vector<128x128xf32> to vector<128x128xbf16>
    %cst_18 = arith.constant dense<0.000000e+00> : vector<128x32xf32>
    %39 = tpu.matmul %38, %29, %cst_18 {dimension_numbers = #tpu.dot_dimension_numbers<[1], [0], [0], [1], [0, 0, 1, 1], [], []>} : vector<128x128xbf16>, vector<128x32xbf16>, vector<128x32xf32> -> vector<128x32xf32>
    %40 = tpu.reciprocal %37 {approx = true} : vector<128x1xf32> -> vector<128x1xf32>
    %41 = vector.broadcast %40 : vector<128x1xf32> to vector<128x32xf32>
    %42 = arith.mulf %39, %41 : vector<128x32xf32>
    %c0_19 = arith.constant 0 : index
    %c32 = arith.constant 32 : index
    %43 = vector.load %arg13[%c0_19, %c32] : memref<128x64xf32, #tpu.memory_space<vmem>>, vector<128x32xf32>
    tpu.vector_store %arg13[%c0_19, %c32], %42 {strides = array<i32>} : memref<128x64xf32, #tpu.memory_space<vmem>>, vector<128x32xf32>,
    %c0_20 = arith.constant 0 : index
    %c0_21 = arith.constant 0 : index
    %44 = vector.load %arg13[%c0_20, %c0_21] : memref<128x64xf32, #tpu.memory_space<vmem>>, vector<128x64xf32>
    %cst_22 = arith.constant dense<0.000000e+00> : vector<128xf32>
    %45 = vector.multi_reduction <add>, %44, %cst_22 [1] : vector<128x64xf32> to vector<128xf32>
    %46 = vector.shape_cast %45 : vector<128xf32> to vector<128x1xf32>
    %cst_23 = arith.constant 6.400000e+01 : f32
    %47 = vector.broadcast %cst_23 : f32 to vector<128x1xf32>
    %48 = arith.divf %46, %47 : vector<128x1xf32>
    %49 = vector.broadcast %48 : vector<128x1xf32> to vector<128x64xf32>
    %50 = arith.subf %44, %49 : vector<128x64xf32>
    %51 = arith.mulf %50, %50 : vector<128x64xf32>
    %cst_24 = arith.constant dense<0.000000e+00> : vector<128xf32>
    %52 = vector.multi_reduction <add>, %51, %cst_24 [1] : vector<128x64xf32> to vector<128xf32>
    %53 = vector.shape_cast %52 : vector<128xf32> to vector<128x1xf32>
    %cst_25 = arith.constant 6.400000e+01 : f32
    %54 = vector.broadcast %cst_25 : f32 to vector<128x1xf32>
    %55 = arith.divf %53, %54 : vector<128x1xf32>
    %56 = vector.broadcast %48 : vector<128x1xf32> to vector<128x64xf32>
    %57 = arith.subf %44, %56 : vector<128x64xf32>
    %cst_26 = arith.constant 9.99999974E-6 : f32
    %58 = vector.broadcast %cst_26 : f32 to vector<128x1xf32>
    %59 = arith.addf %55, %58 : vector<128x1xf32>
    %60 = math.rsqrt %59 : vector<128x1xf32>
    %61 = vector.broadcast %60 : vector<128x1xf32> to vector<128x64xf32>
    %62 = arith.mulf %57, %61 : vector<128x64xf32>
    %c0_27 = arith.constant 0 : index
    %c0_28 = arith.constant 0 : index
    %63 = vector.load %arg8[%c0_27, %c0_28] : memref<1x64xf32, #tpu.memory_space<vmem>>, vector<1x64xf32>
    %64 = vector.broadcast %63 : vector<1x64xf32> to vector<128x64xf32>
    %65 = arith.mulf %62, %64 : vector<128x64xf32>
    %c0_29 = arith.constant 0 : index
    %c0_30 = arith.constant 0 : index
    %66 = vector.load %arg9[%c0_29, %c0_30] : memref<1x64xf32, #tpu.memory_space<vmem>>, vector<1x64xf32>
    %67 = vector.broadcast %66 : vector<1x64xf32> to vector<128x64xf32>
    %68 = arith.addf %65, %67 : vector<128x64xf32>
    %69 = arith.truncf %68 : vector<128x64xf32> to vector<128x64xbf16>
    %c0_31 = arith.constant 0 : index
    %c0_32 = arith.constant 0 : index
    %70 = vector.load %arg10[%c0_31, %c0_32] : memref<128x64xbf16, #tpu.memory_space<vmem>>, vector<128x64xbf16>
    %cst_33 = arith.constant dense<0.000000e+00> : vector<128x128xf32>
    %71 = tpu.matmul %69, %70, %cst_33 {dimension_numbers = #tpu.dot_dimension_numbers<[1], [1], [0], [0], [0, 0, 1, 0], [], []>} : vector<128x64xbf16>, vector<128x64xbf16>, vector<128x128xf32> -> vector<128x128xf32>
    %c0_34 = arith.constant 0 : index
    %c0_35 = arith.constant 0 : index
    %72 = vector.load %arg11[%c0_34, %c0_35] : memref<1x128xf32, #tpu.memory_space<vmem>>, vector<1x128xf32>
    %73 = vector.broadcast %72 : vector<1x128xf32> to vector<128x128xf32>
    %74 = arith.addf %71, %73 : vector<128x128xf32>
    %c0_36 = arith.constant 0 : index
    %c0_37 = arith.constant 0 : index
    %c0_38 = arith.constant 0 : index
    %75 = vector.load %arg12[%c0_36, %c0_37, %c0_38] : memref<1x128x128xf32, #tpu.memory_space<vmem>>, vector<1x128x128xf32>
    %76 = vector.shape_cast %75 : vector<1x128x128xf32> to vector<128x128xf32>
    %77 = vector.shape_cast %74 : vector<128x128xf32> to vector<1x128x128xf32>
    tpu.vector_store %arg12[%c0_36, %c0_37, %c0_38], %77 {strides = array<i32>} : memref<1x128x128xf32, #tpu.memory_space<vmem>>, vector<1x128x128xf32>,
    return
  }
  func.func @transform_0(%arg0: i32, %arg1: i32) -> (i32, i32, i32) {
    %c0_i32 = arith.constant 0 : i32
    %c0_i32_0 = arith.constant 0 : i32
    return %arg0, %arg1, %c0_i32 : i32, i32, i32
  }
  func.func @transform_1(%arg0: i32, %arg1: i32) -> (i32, i32, i32) {
    %c0_i32 = arith.constant 0 : i32
    %c0_i32_0 = arith.constant 0 : i32
    %c0_i32_1 = arith.constant 0 : i32
    return %arg0, %c0_i32, %c0_i32_0 : i32, i32, i32
  }
  func.func @transform_2(%arg0: i32, %arg1: i32) -> (i32, i32, i32) {
    %c0_i32 = arith.constant 0 : i32
    %c0_i32_0 = arith.constant 0 : i32
    %c0_i32_1 = arith.constant 0 : i32
    return %arg0, %c0_i32, %c0_i32_0 : i32, i32, i32
  }
  func.func @transform_3(%arg0: i32, %arg1: i32) -> (i32, i32) {
    %c0_i32 = arith.constant 0 : i32
    %c0_i32_0 = arith.constant 0 : i32
    %c0_i32_1 = arith.constant 0 : i32
    return %c0_i32, %c0_i32_0 : i32, i32
  }
  func.func @transform_4(%arg0: i32, %arg1: i32) -> (i32, i32) {
    %c0_i32 = arith.constant 0 : i32
    %c0_i32_0 = arith.constant 0 : i32
    %c0_i32_1 = arith.constant 0 : i32
    return %c0_i32, %c0_i32_0 : i32, i32
  }
  func.func @transform_5(%arg0: i32, %arg1: i32) -> (i32, i32) {
    %c0_i32 = arith.constant 0 : i32
    %c0_i32_0 = arith.constant 0 : i32
    %c0_i32_1 = arith.constant 0 : i32
    return %c0_i32, %c0_i32_0 : i32, i32
  }
  func.func @transform_6(%arg0: i32, %arg1: i32) -> (i32, i32) {
    %c0_i32 = arith.constant 0 : i32
    %c0_i32_0 = arith.constant 0 : i32
    %c0_i32_1 = arith.constant 0 : i32
    return %c0_i32, %c0_i32_0 : i32, i32
  }
  func.func @transform_7(%arg0: i32, %arg1: i32) -> (i32, i32) {
    %c0_i32 = arith.constant 0 : i32
    %c0_i32_0 = arith.constant 0 : i32
    %c0_i32_1 = arith.constant 0 : i32
    return %c0_i32, %c0_i32_0 : i32, i32
  }
  func.func @transform_8(%arg0: i32, %arg1: i32) -> (i32, i32) {
    %c0_i32 = arith.constant 0 : i32
    %c0_i32_0 = arith.constant 0 : i32
    %c0_i32_1 = arith.constant 0 : i32
    return %c0_i32, %c0_i32_0 : i32, i32
  }
  func.func @transform_9(%arg0: i32, %arg1: i32) -> (i32, i32) {
    %c0_i32 = arith.constant 0 : i32
    %c0_i32_0 = arith.constant 0 : i32
    %c0_i32_1 = arith.constant 0 : i32
    return %c0_i32, %c0_i32_0 : i32, i32
  }
  func.func @transform_10(%arg0: i32, %arg1: i32) -> (i32, i32, i32) {
    %c0_i32 = arith.constant 0 : i32
    %c0_i32_0 = arith.constant 0 : i32
    return %arg0, %arg1, %c0_i32 : i32, i32, i32
  }
}

</mosaic_0001>

<bundles_post_ra>
// kernel: tpu_custom_call.1
= control target key start
LH: loop header
LB: loop body
LE: loop exit
PB: predicated region body
PF: predicated region fallthrough
CT: control target
= control target key end

     0   :  { %s4696_s0 = inlined_call_operand.hbm [shape: bf16[2,256,128], index: 0, kind: input, shape index: {}]   ;;  %s4697_s1 = inlined_call_operand.hbm [shape: bf16[2,128,128], index: 1, kind: input, shape index: {}]   ;;  %s4698_s2 = inlined_call_operand.hbm [shape: bf16[2,128,128], index: 2, kind: input, shape index: {}]   ;;  %s4699_s3 = inlined_call_operand.vmem [shape: bf16[64,128], index: 3, kind: input, shape index: {}]   ;;  %s4700_s4 = inlined_call_operand.vmem [shape: bf16[64,128], index: 4, kind: input, shape index: {}]   ;;  %s4701_s5 = inlined_call_operand.vmem [shape: bf16[64,128], index: 5, kind: input, shape index: {}]   ;;  %s4702_s6 = inlined_call_operand.vmem [shape: f32[1,64], index: 6, kind: input, shape index: {}]   ;;  %s4703_s7 = inlined_call_operand.vmem [shape: f32[1,64], index: 7, kind: input, shape index: {}]   ;;  %s4704_s8 = inlined_call_operand.vmem [shape: bf16[128,64], index: 8, kind: input, shape index: {}]   ;;  %s4705_s9 = inlined_call_operand.vmem [shape: f32[1,128], index: 9, kind: input, shape index: {}]   ;;  %s4706_s10 = inlined_call_operand.hbm [shape: f32[2,256,128], index: 10, kind: output, shape index: {}]  }
   0x1   :  { %4727 = sst [smem:[#allocation26_spill]] %s4697_s1 }
   0x2   :  { %4728 = sst [smem:[#allocation27_spill]] %s4698_s2 }
   0x3   :  { %4729 = sst [smem:[#allocation28_spill]] %s4699_s3 }
   0x4   :  { %4730 = sst [smem:[#allocation29_spill]] %s4700_s4 }
   0x5   :  { %4731 = sst [smem:[#allocation30_spill]] %s4701_s5 }
   0x6   :  { %4732 = sst [smem:[#allocation31_spill]] %s4702_s6 }
   0x7   :  { %4733 = sst [smem:[#allocation32_spill]] %s4703_s7 }
   0x8   :  { %4734 = sst [smem:[#allocation33_spill]] %s4704_s8 }
   0x9   :  { %4735 = sst [smem:[#allocation34_spill]] %s4705_s9 }
   0xa   :  { %4736 = sst [smem:[#allocation35_spill]] %s4706_s10 }
   0xb   :  { %15 = vsyncpa [#allocation6], 0 }
   0xc   :  { %17 = vsyncpa [#allocation6 + $0x1], 0 }
   0xd   :  { %18 = vsyncpa [#allocation9], 0 }
   0xe   :  { %20 = vsyncpa [#allocation9 + $0x1], 0 }
   0xf   :  { %21 = vsyncpa [#allocation7], 0 }
  0x10   :  { %23 = vsyncpa [#allocation7 + $0x1], 0  ;;  %s3600_s13 = smov 0   ;;  %s3602_s14 = smov 0  }
  0x11   :  { %s3604_s15 = smov 0   ;;  %s3606_s16 = smov 0  }
  0x12   :  { %s3608_s17 = smov 0   ;;  %s3610_s18 = smov 0  }
  0x13   :  { %s3612_s19 = smov 0   ;;  %s3614_s20 = smov 0  }
  0x14   :  { %s3616_s21 = smov 0   ;;  %s3618_s22 = smov 0  }
  0x15   :  { %s3620_s23 = smov 0  }
  0x16 LB: > { %4737 = sst [smem:[#allocation15_spill]] %s3500_s14  ;;  %s3654_s24 = sadd.s32 4294967295, %s3536_s23   ;;  %s3536_s23 = sphi %s3620_s23, %s29_s23   ;;  %s3532_s22 = sphi %s3618_s22, %s4797_s22   ;;  %s3528_s21 = sphi %s3616_s21, %s4796_s21   ;;  %s3524_s20 = sphi %s3614_s20, %s4795_s20   ;;  %s3520_s19 = sphi %s3612_s19, %s4794_s19   ;;  %s3516_s18 = sphi %s3610_s18, %s4793_s18   ;;  %s3512_s17 = sphi %s3608_s17, %s4792_s17   ;;  %s3508_s16 = sphi %s3606_s16, %s4791_s16   ;;  %s3504_s15 = sphi %s3604_s15, %s4790_s15   ;;  %s3500_s14 = sphi %s3602_s14, %s4789_s14   ;;  %s3496_s13 = sphi %s3600_s13, %s4788_s13  }
  0x17   : > { %4738 = sst [smem:[#allocation16_spill]] %s3508_s16  ;;  %p58_p0 = scmp.eq.s32.totalorder %s3536_s23, 0 }
  0x18   : > { %4739 = sst [smem:[#allocation17_spill]] %s3520_s19  ;;  %p64_p1 = scmp.eq.s32.totalorder %s3654_s24, 0 }
  0x19   : > { %4740 = sst [smem:[#allocation18_spill]] %s3524_s20  ;;  %p83_p2 = scmp.ne.s32.totalorder %s3504_s15, %s3500_s14 }
  0x1a   : > { %p89_p3 = scmp.ne.s32.totalorder %s3500_s14, %s3496_s13  ;;  %p4714_p6 = scmp.lt.s32.totalorder %s3536_s23, 4 }
  0x1b   : > { %p3665_p4 = por %p83_p2, %p58_p0  ;;  %s359_s29 = sand.u32 1, %s3536_s23  }
  0x1c   : > { %p3671_p5 = por %p89_p3, %p64_p1  ;;  %s361_s30 = sand.u32 1, %s3504_s15  }
  0x1d   : > { %s2668_s11 = sshll.u32 %s361_s30, 6  ;;  %s2950_s12 = sshll.u32 %s3532_s22, 6 }
  0x1e   : > { %s4742_s28 = scalar_select %p3671_p5, 1, 0 }
  0x1f   : > { %s4744_s1 = sld [smem:[#allocation26_spill]]  ;;  %s363_s20 = scalar_lea.vmem [#allocation8], %s2668_s11 }
  0x20   : > { %4743 = sst [smem:[#allocation19_spill]] %s4742_s28  ;;  %s371_s9 = sshll.u32 %s363_s20, 4  ;;  %s372_s9 = int_to_ptr.vmem [resolvable:$true] %s371_s9 }
  0x21   : > { %p3686_p7 = pnand %p4714_p6, %p3665_p4  ;;  %s4746_s2 = sld [smem:[#allocation27_spill]] }
  0x22   : > { %s3693_s20 = scalar_lea.sflag [#allocation9], %s359_s29  ;;  %s4708_s27 = smov 64  }
  0x23   : > { %s385_s6 = scalar_lea.vmem [#allocation10], %s2668_s11  ;;  %p2674_p8 = scmp.ge.s32.totalorder %s3536_s23, 1 }
  0x24   : > { %p401_p9 = scmp.lt.s32.totalorder %s3536_s23, 5  ;;  %s2661_s30 = sadd.s32 4294967294, %s3536_s23  }
  0x25   : > { %s368_s13 = scalar_lea.hbm %s4744_s1, %s2950_s12  ;;  %p63_p12 = scmp.ne.s32.totalorder %s3512_s17, %s3508_s16 }
  0x26   : > { %s369_s26 = sshll.u32 %s368_s13, 4  ;;  %s4710_s13 = smov 4   ;;  %s370_s26 = int_to_ptr.hbm [resolvable:$true] %s369_s26 }
  0x27   : > { %s390_s10 = scalar_lea.hbm %s4746_s2, %s2950_s12  ;;  %s3703_s12 = sshll.u32 %s385_s6, 4 }
  0x28   : > { %s391_s25 = sshll.u32 %s390_s10, 4  ;;  %4747 = sst [smem:[#allocation20_spill]] %s3703_s12  ;;  %s3701_s25 = int_to_ptr.hbm [resolvable:$true] %s391_s25 }
  0x29   : > { %3050 = dma.hbm_to_vmem [thread:$0]  (!%p3686_p7), %s370_s26, 1024, %s372_s9, %s3693_s20, %s4708_s27, %s4708_s27, %s4710_s13  }
  0x2a   : > { %p3707_p10 = pnand %p2674_p8, %p401_p9  ;;  %s38_s9 = sadd.s32 1, %s3528_s21 }
  0x2b   : > { %p39_p11 = scmp.ge.s32.totalorder %s38_s9, 2  ;;  %s50_s26 = sadd.s32 1, %s3516_s18 }
  0x2c   : > { %p288_p13 = scmp.eq.s32.totalorder %s3654_s24, 3  ;;  %s4750_s11 = sadd.s32 1, %s3532_s22 }
  0x2d   : > { %s4799_s9 = smov (%p39_p11, %s38_s9), 0  ;;  %s4801_s11 = smov (!%p39_p11, %s4750_s11), %s3532_s22 }
  0x2e   : > { %4749 = sst [smem:[#allocation21_spill]] %s4799_s9  ;;  %s46_s10 = ssub.s32 %s3528_s21, %s4799_s9 }
  0x2f   : > { %p57_p2 = scmp.ne.s32.totalorder %s3516_s18, %s3512_s17  ;;  %p43_p3 = scmp.ge.s32.totalorder %s4801_s11, 2 }
  0x30   : > { %p3729_p4 = por %p64_p1, %p63_p12  ;;  %p294_p9 = scmp.eq.s32.totalorder %s2661_s30, 3 }
  0x31   : > { %p3733_p8 = por %p288_p13, %p57_p2  ;;  %s4803_s11 = smov (%p43_p3, %s4801_s11), 0 }
  0x32   : > { %4754 = sst [smem:[#allocation23_spill]] %s4803_s11  ;;  %p3739_p11 = por %p294_p9, %p63_p12 }
  0x33   : > { %s4752_s27 = scalar_select %p3733_p8, 1, 0 }
  0x34   : > { %s4755_s13 = scalar_select %p3739_p11, 1, 0 }
  0x35   : > { %4753 = sst [smem:[#allocation22_spill]] %s4752_s27  ;;  %s335_s12 = sand.u32 1, %s3516_s18  }
  0x36   : > { %4756 = sst [smem:[#allocation24_spill]] %s4755_s13  ;;  %s45_s1 = ssub.s32 %s3532_s22, %s4803_s11 }
  0x37   : > { %p3748_p1 = por %p58_p0, %p57_p2  ;;  %s47_s9 = sor.u32 %s46_s10, %s45_s1 }
  0x38   : > { %p74_p13 = scmp.eq.s32.totalorder %s45_s1, 0  ;;  %p48_p6 = scmp.eq.s32.totalorder %s47_s9, 0 }
  0x39   : > { %s2664_s30 = sshll.u32 %s335_s12, 6  ;;  %s4758_s16 = sadd.s32 1, %s3504_s15 }
  0x3a   : > { %s4759_s27 = sld [smem:[#allocation20_spill]]  ;;  %s2665_s11 = sshll.u32 %s3528_s21, 4 }
  0x3b   : > { %s3755_s8 = scalar_select %p74_p13, %s3504_s15, %s4758_s16  }
  0x3c   : > { %s3758_s13 = scalar_select %p48_p6, %s3516_s18, %s50_s26  }
  0x3d   : > { %4760 = sst [smem:[#allocation25_spill]] %s3755_s8  ;;  %s2666_s3 = sshll.u32 %s3532_s22, 5 }
  0x3e   : > { %s339_s5 = scalar_lea.vmem [#allocation5], %s2664_s30  ;;  %s344_s19 = sadd.s32 %s2666_s3, %s2665_s11 }
  0x3f   : > { %s349_s4 = sshll.u32 %s339_s5, 4  ;;  %s2667_s28 = sshll.u32 %s344_s19, 2  ;;  %s350_s4 = int_to_ptr.vmem [resolvable:$true] %s349_s4 }
  0x40   : > { %p4761_p0 = scmp.lt.s32.totalorder %s3536_s23, 4  ;;  %s346_s10 = scalar_lea.hbm %s4696_s0, %s2667_s28 }
  0x41   : > { %s347_s14 = sshll.u32 %s346_s10, 4  ;;  %s336_s16 = scalar_lea.sflag [#allocation6], %s335_s12  ;;  %s348_s14 = int_to_ptr.hbm [resolvable:$true] %s347_s14 }
  0x42   : > { %p3045_p12 = pnand %p4761_p0, %p3748_p1  ;;  %s4762_s8 = smov 4  }
  0x43   : > { %s4763_s26 = smov 64   ;;  %s4764_s3 = int_to_ptr.vmem [resolvable:$true] %s4759_s27 }
  0x44   : > { %3047 = dma.hbm_to_vmem [thread:$0]  (!%p3045_p12), %s348_s14, 1024, %s350_s4, %s336_s16, %s4763_s26, %s4763_s26, %s4762_s8  }
  0x45   : > { %3053 = dma.hbm_to_vmem [thread:$0]  (!%p3686_p7), %s3701_s25, 1024, %s4764_s3, %s3693_s20, %s4763_s26, %s4763_s26, %s4762_s8  }
  0x46   : > { %405 = sbr.rel (%p3707_p10) target bundleno = 2287 (0x8ef), region = 60  ;;  %s3784_s2 = sand.u32 (!%p3707_p10), 1, %s3512_s17  }
  0x47   : > { %s2675_s5 = sshll.u32 (!%p3707_p10), %s3784_s2, 6  ;;  %s408_s19 = scalar_lea.sflag (!%p3707_p10), [#allocation6], %s3784_s2 }
  0x48   : > { %s3788_s28 = scalar_lea.vmem (!%p3707_p10), [#allocation5], %s2675_s5 }
  0x4b   : > { %3483 = dma.done.wait (%p3729_p4), %s408_s19, 1024  }
  0x4c   : > { %3485 = vsyncadd (%p3729_p4), %s408_s19, 4294966272  ;;  %s4765_s4 = sld [smem:[#allocation15_spill]]  ;;  %s417_s8 = sand.u32 1, %s3654_s24  }
  0x4d   : > { %s418_s20 = scalar_lea.sflag [#allocation9], %s417_s8 }
  0x52   : > { %s419_s14 = sand.u32 1, %s4765_s4  }
  0x53   : > { %s2676_s25 = sshll.u32 %s419_s14, 6 }
  0x54   : > { %s3796_s27 = scalar_lea.vmem [#allocation8], %s2676_s25 }
  0x55   : > { %3487 = dma.done.wait (%p3671_p5), %s418_s20, 2048  }
  0x56   : > { %3489 = vsyncadd (%p3671_p5), %s418_s20, 4294965248  ;;  %s2678_s12 = sshll.u32 %s3784_s2, 7  ;;  %s3803_s29 = scalar_lea.vmem [#allocation10], %s2676_s25 }
  0x57   : > { %s3805_s11 = scalar_lea.vmem [#allocation11], %s2678_s12  ;;  %s4767_s6 = sld [smem:[#allocation17_spill]] }
  0x5d   : > { %p2679_p6 = scmp.ne.s32.totalorder %s4767_s6, 0 }
  0x5e   : > { %s4768_s1 = sld [smem:[#allocation29_spill]] (!%p2679_p6) }
  0x5f   : > { %485 = sbr.rel (%p2679_p6) target bundleno = 324 (0x144), region = 76  ;;  %s4769_s16 = sld [smem:[#allocation30_spill]] (!%p2679_p6) }
  0x64   : > { %v2963_v0 = vld [vmem:[%s4768_s1 + $0x18] sm:$0xff]  ;;  %v2962_v2 = vld [vmem:[%s4768_s1 + $0x10] sm:$0xff]  ;;  %v2961_v4 = vld [vmem:[%s4768_s1 + $0x8] sm:$0xff]  ;;  %vm647_vm0 = vcmask 519168  }
  0x65   : > { %s4770_s26 = smov %s4769_s16  ;;  %v2975_v1 = vld [vmem:[%s4769_s16 + $0x18] sm:$0xff]  ;;  %586 = vmatpush.bf16.xpose.msra.mxu0 %v2963_v0  ;;  %3012 = vmatpush.bf16.xpose.msra.mxu2 %v2963_v0  ;;  %v2960_v6 = vld [vmem:[%s4768_s1] sm:$0xff]  ;;  %v2953_v12 = vld [vmem:[%s3796_s27 + $0x8] sm:$0xff] }
  0x66   : > { %764 = vmatpush.bf16.xpose.msra.mxu1 %v2975_v1  ;;  %3016 = vmatpush.bf16.xpose.msra.mxu3 %v2975_v1  ;;  %v2974_v3 = vld [vmem:[%s4770_s26 + $0x10] sm:$0xff]  ;;  %v2973_v5 = vld [vmem:[%s4770_s26 + $0x8] sm:$0xff]  ;;  %v2972_v7 = vld [vmem:[%s4770_s26] sm:$0xff] }
  0x67   : > { %v2952_v8 = vld [vmem:[%s3796_s27] sm:$0xff]  ;;  %v2957_v13 = vld [vmem:[%s3796_s27 + $0x28] sm:$0xff]  ;;  %v2954_v16 = vld [vmem:[%s3796_s27 + $0x10] sm:$0xff] }
  0x68   : > { %v2956_v9 = vld [vmem:[%s3796_s27 + $0x20] sm:$0xff]  ;;  %v2965_v14 = vld [vmem:[%s3803_s29 + $0x8] sm:$0xff]  ;;  %v2958_v17 = vld [vmem:[%s3796_s27 + $0x30] sm:$0xff] }
  0x69   : > { %v2964_v10 = vld [vmem:[%s3803_s29] sm:$0xff]  ;;  %v2969_v15 = vld [vmem:[%s3803_s29 + $0x28] sm:$0xff]  ;;  %v2966_v18 = vld [vmem:[%s3803_s29 + $0x10] sm:$0xff] }
  0x6a   : > { %v2968_v11 = vld [vmem:[%s3803_s29 + $0x20] sm:$0xff]  ;;  %v2970_v19 = vld [vmem:[%s3803_s29 + $0x30] sm:$0xff]  ;;  %v2955_v20 = vld [vmem:[%s3796_s27 + $0x18] sm:$0xff] }
  0x6b   : > { %v2959_v21 = vld [vmem:[%s3796_s27 + $0x38] sm:$0xff] }
  0x6c   : > { %v2967_v22 = vld [vmem:[%s3803_s29 + $0x18] sm:$0xff] }
  0x6d   : > { %587 = vmatpush.bf16.xpose.msra.mxu0 %v2962_v2  ;;  %3013 = vmatpush.bf16.xpose.msra.mxu2 %v2962_v2  ;;  %v2971_v23 = vld [vmem:[%s3803_s29 + $0x38] sm:$0xff] }
  0x6e   : > { %765 = vmatpush.bf16.xpose.msra.mxu1 %v2974_v3  ;;  %3017 = vmatpush.bf16.xpose.msra.mxu3 %v2974_v3 }
  0x75   : > { %588 = vmatpush.bf16.xpose.msra.mxu0 %v2961_v4  ;;  %3014 = vmatpush.bf16.xpose.msra.mxu2 %v2961_v4 }
  0x76   : > { %766 = vmatpush.bf16.xpose.msra.mxu1 %v2973_v5  ;;  %3018 = vmatpush.bf16.xpose.msra.mxu3 %v2973_v5 }
  0x7d   : > { %589 = vmatpush.bf16.xpose.msra.mxu0 %v2960_v6  ;;  %3015 = vmatpush.bf16.xpose.msra.mxu2 %v2960_v6 }
  0x7e   : > { %767 = vmatpush.bf16.xpose.msra.mxu1 %v2972_v7  ;;  %3019 = vmatpush.bf16.xpose.msra.mxu3 %v2972_v7 }
  0x84   : > { %590 = vmatmul.bf16.vlgmr.msra.gmra.mxu0 %v2952_v8  ;;  %610 = vmatmul.bf16.vlgmr.msra.gmra.mxu2 %v2956_v9 }
  0x85   : > { %768 = vmatmul.bf16.vlgmr.msra.gmra.mxu1 %v2964_v10  ;;  %788 = vmatmul.bf16.vlgmr.msra.gmra.mxu3 %v2968_v11 }
  0x94   : > { %595 = vmatmul.bf16.gmra.mxu0 %v2953_v12  ;;  %615 = vmatmul.bf16.gmra.mxu2 %v2957_v13 }
  0x95   : > { %773 = vmatmul.bf16.gmra.mxu1 %v2965_v14  ;;  %793 = vmatmul.bf16.gmra.mxu3 %v2969_v15 }
  0xa4   : > { %600 = vmatmul.bf16.gmra.mxu0 %v2954_v16  ;;  %620 = vmatmul.bf16.gmra.mxu2 %v2958_v17 }
  0xa5   : > { %778 = vmatmul.bf16.gmra.mxu1 %v2966_v18  ;;  %798 = vmatmul.bf16.gmra.mxu3 %v2970_v19 }
  0xb4   : > { %605 = vmatmul.bf16.gmra.mxu0 %v2955_v20  ;;  %625 = vmatmul.bf16.gmra.mxu2 %v2959_v21 }
  0xb5   : > { %783 = vmatmul.bf16.gmra.mxu1 %v2967_v22  ;;  %803 = vmatmul.bf16.gmra.mxu3 %v2971_v23 }
 0x101   : > { %v591_v24 = vpop.f32.mrf.mxu0 }
 0x102   : > { %v631_v25 = vpack.c.bf16 %v591_v24, %v591_v24  ;;  %v769_v26 = vpop.f32.mrf.mxu1 }
 0x103   : > { %v809_v27 = vpack.c.bf16 %v769_v26, %v769_v26 }
 0x104   : > { %648 = vst.msk [vmem:[#allocation3] sm:$0xf] %vm647_vm0, %v631_v25 }
 0x105   : > { %825 = vst.msk [vmem:[#allocation4] sm:$0xf] %vm647_vm0, %v809_v27 }
 0x107   : > { %v611_v28 = vpop.f32.mrf.mxu2 }
 0x108   : > { %v639_v29 = vpack.c.bf16 %v611_v28, %v611_v28  ;;  %v789_v30 = vpop.f32.mrf.mxu3 }
 0x109   : > { %v817_v31 = vpack.c.bf16 %v789_v30, %v789_v30  ;;  %v593_v32 = vpop.f32.mrf.mxu0 }
 0x10a   : > { %656 = vst.msk [vmem:[#allocation3 + $0x20] sm:$0xf] %vm647_vm0, %v639_v29  ;;  %v632_v33 = vpack.c.bf16 %v593_v32, %v593_v32  ;;  %v771_v34 = vpop.f32.mrf.mxu1 }
 0x10b   : > { %833 = vst.msk [vmem:[#allocation4 + $0x20] sm:$0xf] %vm647_vm0, %v817_v31  ;;  %v810_v35 = vpack.c.bf16 %v771_v34, %v771_v34 }
 0x10c   : > { %649 = vst.msk [vmem:[#allocation3 + $0x4] sm:$0xf] %vm647_vm0, %v632_v33 }
 0x10d   : > { %826 = vst.msk [vmem:[#allocation4 + $0x4] sm:$0xf] %vm647_vm0, %v810_v35 }
 0x10f   : > { %v613_v36 = vpop.f32.mrf.mxu2 }
 0x110   : > { %v640_v37 = vpack.c.bf16 %v613_v36, %v613_v36  ;;  %v791_v38 = vpop.f32.mrf.mxu3 }
 0x111   : > { %v818_v39 = vpack.c.bf16 %v791_v38, %v791_v38  ;;  %v596_v40 = vpop.f32.mrf.mxu0 }
 0x112   : > { %657 = vst.msk [vmem:[#allocation3 + $0x24] sm:$0xf] %vm647_vm0, %v640_v37  ;;  %v633_v41 = vpack.c.bf16 %v596_v40, %v596_v40  ;;  %v774_v42 = vpop.f32.mrf.mxu1 }
 0x113   : > { %834 = vst.msk [vmem:[#allocation4 + $0x24] sm:$0xf] %vm647_vm0, %v818_v39  ;;  %v811_v43 = vpack.c.bf16 %v774_v42, %v774_v42 }
 0x114   : > { %650 = vst.msk [vmem:[#allocation3 + $0x8] sm:$0xf] %vm647_vm0, %v633_v41 }
 0x115   : > { %827 = vst.msk [vmem:[#allocation4 + $0x8] sm:$0xf] %vm647_vm0, %v811_v43 }
 0x117   : > { %v616_v44 = vpop.f32.mrf.mxu2 }
 0x118   : > { %v641_v45 = vpack.c.bf16 %v616_v44, %v616_v44  ;;  %v794_v46 = vpop.f32.mrf.mxu3 }
 0x119   : > { %v819_v47 = vpack.c.bf16 %v794_v46, %v794_v46  ;;  %v598_v48 = vpop.f32.mrf.mxu0 }
 0x11a   : > { %658 = vst.msk [vmem:[#allocation3 + $0x28] sm:$0xf] %vm647_vm0, %v641_v45  ;;  %v634_v49 = vpack.c.bf16 %v598_v48, %v598_v48  ;;  %v776_v50 = vpop.f32.mrf.mxu1 }
 0x11b   : > { %835 = vst.msk [vmem:[#allocation4 + $0x28] sm:$0xf] %vm647_vm0, %v819_v47  ;;  %v812_v51 = vpack.c.bf16 %v776_v50, %v776_v50 }
 0x11c   : > { %651 = vst.msk [vmem:[#allocation3 + $0xc] sm:$0xf] %vm647_vm0, %v634_v49 }
 0x11d   : > { %828 = vst.msk [vmem:[#allocation4 + $0xc] sm:$0xf] %vm647_vm0, %v812_v51 }
 0x11f   : > { %v618_v52 = vpop.f32.mrf.mxu2 }
 0x120   : > { %v642_v53 = vpack.c.bf16 %v618_v52, %v618_v52  ;;  %v796_v54 = vpop.f32.mrf.mxu3 }
 0x121   : > { %v820_v55 = vpack.c.bf16 %v796_v54, %v796_v54  ;;  %v601_v56 = vpop.f32.mrf.mxu0 }
 0x122   : > { %659 = vst.msk [vmem:[#allocation3 + $0x2c] sm:$0xf] %vm647_vm0, %v642_v53  ;;  %v635_v57 = vpack.c.bf16 %v601_v56, %v601_v56  ;;  %v779_v58 = vpop.f32.mrf.mxu1 }
 0x123   : > { %836 = vst.msk [vmem:[#allocation4 + $0x2c] sm:$0xf] %vm647_vm0, %v820_v55  ;;  %v813_v59 = vpack.c.bf16 %v779_v58, %v779_v58 }
 0x124   : > { %652 = vst.msk [vmem:[#allocation3 + $0x10] sm:$0xf] %vm647_vm0, %v635_v57 }
 0x125   : > { %829 = vst.msk [vmem:[#allocation4 + $0x10] sm:$0xf] %vm647_vm0, %v813_v59 }
 0x127   : > { %v621_v60 = vpop.f32.mrf.mxu2 }
 0x128   : > { %v643_v61 = vpack.c.bf16 %v621_v60, %v621_v60  ;;  %v799_v62 = vpop.f32.mrf.mxu3 }
 0x129   : > { %v821_v63 = vpack.c.bf16 %v799_v62, %v799_v62  ;;  %v603_v0 = vpop.f32.mrf.mxu0 }
 0x12a   : > { %660 = vst.msk [vmem:[#allocation3 + $0x30] sm:$0xf] %vm647_vm0, %v643_v61  ;;  %v636_v1 = vpack.c.bf16 %v603_v0, %v603_v0  ;;  %v781_v2 = vpop.f32.mrf.mxu1 }
 0x12b   : > { %837 = vst.msk [vmem:[#allocation4 + $0x30] sm:$0xf] %vm647_vm0, %v821_v63  ;;  %v814_v3 = vpack.c.bf16 %v781_v2, %v781_v2 }
 0x12c   : > { %653 = vst.msk [vmem:[#allocation3 + $0x14] sm:$0xf] %vm647_vm0, %v636_v1 }
 0x12d   : > { %830 = vst.msk [vmem:[#allocation4 + $0x14] sm:$0xf] %vm647_vm0, %v814_v3 }
 0x12f   : > { %v623_v4 = vpop.f32.mrf.mxu2 }
 0x130   : > { %v644_v5 = vpack.c.bf16 %v623_v4, %v623_v4  ;;  %v801_v6 = vpop.f32.mrf.mxu3 }
 0x131   : > { %v822_v7 = vpack.c.bf16 %v801_v6, %v801_v6  ;;  %v606_v8 = vpop.f32.mrf.mxu0 }
 0x132   : > { %661 = vst.msk [vmem:[#allocation3 + $0x34] sm:$0xf] %vm647_vm0, %v644_v5  ;;  %v637_v9 = vpack.c.bf16 %v606_v8, %v606_v8  ;;  %v784_v10 = vpop.f32.mrf.mxu1 }
 0x133   : > { %838 = vst.msk [vmem:[#allocation4 + $0x34] sm:$0xf] %vm647_vm0, %v822_v7  ;;  %v815_v11 = vpack.c.bf16 %v784_v10, %v784_v10 }
 0x134   : > { %654 = vst.msk [vmem:[#allocation3 + $0x18] sm:$0xf] %vm647_vm0, %v637_v9 }
 0x135   : > { %831 = vst.msk [vmem:[#allocation4 + $0x18] sm:$0xf] %vm647_vm0, %v815_v11 }
 0x137   : > { %v626_v12 = vpop.f32.mrf.mxu2 }
 0x138   : > { %v645_v13 = vpack.c.bf16 %v626_v12, %v626_v12  ;;  %v804_v14 = vpop.f32.mrf.mxu3 }
 0x139   : > { %v823_v15 = vpack.c.bf16 %v804_v14, %v804_v14  ;;  %v608_v16 = vpop.f32.mrf.mxu0 }
 0x13a   : > { %662 = vst.msk [vmem:[#allocation3 + $0x38] sm:$0xf] %vm647_vm0, %v645_v13  ;;  %v638_v17 = vpack.c.bf16 %v608_v16, %v608_v16  ;;  %v786_v18 = vpop.f32.mrf.mxu1 }
 0x13b   : > { %839 = vst.msk [vmem:[#allocation4 + $0x38] sm:$0xf] %vm647_vm0, %v823_v15  ;;  %v816_v19 = vpack.c.bf16 %v786_v18, %v786_v18 }
 0x13c   : > { %655 = vst.msk [vmem:[#allocation3 + $0x1c] sm:$0xf] %vm647_vm0, %v638_v17 }
 0x13d   : > { %832 = vst.msk [vmem:[#allocation4 + $0x1c] sm:$0xf] %vm647_vm0, %v816_v19 }
 0x13f   : > { %v628_v20 = vpop.f32.mrf.mxu2 }
 0x140   : > { %v646_v21 = vpack.c.bf16 %v628_v20, %v628_v20  ;;  %v806_v22 = vpop.f32.mrf.mxu3 }
 0x141   : > { %v824_v23 = vpack.c.bf16 %v806_v22, %v806_v22 }
 0x142   : > { %663 = vst.msk [vmem:[#allocation3 + $0x3c] sm:$0xf] %vm647_vm0, %v646_v21 }
 0x143   : > { %840 = vst.msk [vmem:[#allocation4 + $0x3c] sm:$0xf] %vm647_vm0, %v824_v23 }
 0x144 PF: > { %s4771_s30 = sld [smem:[#allocation28_spill]]  ;;  %v2976_v28 = vld [vmem:[%s3788_s28] sm:$0xff]  ;;  %v2977_v29 = vld [vmem:[%s3788_s28 + $0x8] sm:$0xff]  ;;  %v2978_v30 = vld [vmem:[%s3788_s28 + $0x10] sm:$0xff]  ;;  %vm1114_vm1 = vcmask 261120   ;;  %s3541_s4 = smov 32  }
 0x145   : > { %v2979_v33 = vld [vmem:[%s3788_s28 + $0x18] sm:$0xff]  ;;  %v2994_v34 = vld [vmem:[#allocation3 + $0x30] sm:$0xff]  ;;  %v2993_v36 = vld [vmem:[#allocation3 + $0x28] sm:$0xff]  ;;  %vm1895_vm2 = vcmask 523520   ;;  %vm1928_vm3 = vcmask 523264   ;;  %s4772_s14 = sld [smem:[#allocation33_spill]] }
 0x146   : > { %v1158_v35 = vsel %vm1114_vm1, %v2994_v34, 0  ;;  %v1155_v37 = vsel %vm1114_vm1, %v2993_v36, 0  ;;  %v2980_v38 = vld [vmem:[%s3788_s28 + $0x20] sm:$0xff]  ;;  %v2991_v41 = vld [vmem:[#allocation3 + $0x18] sm:$0xff]  ;;  %v2981_v43 = vld [vmem:[%s3788_s28 + $0x28] sm:$0xff]  ;;  %s4775_s6 = sld [smem:[#allocation32_spill]] }
 0x147   : > { %v3900_v39 = vld [vmem:[#allocation3 + $0x20] sm:$0xff]  ;;  %v1149_v42 = vsel %vm1114_vm1, %v2991_v41, 0  ;;  %v3906_v44 = vld [vmem:[#allocation3 + $0x10] sm:$0xff]  ;;  %v3910_v46 = vld [vmem:[#allocation3 + $0x8] sm:$0xff]  ;;  %s4776_s29 = sld [smem:[#allocation34_spill]]  ;;  %s2524_s20 = sshll.u32 %s3805_s11, 4  ;;  %s2525_s20 = int_to_ptr.vmem [resolvable:$true] %s2524_s20 }
 0x148   : > { %v1152_v40 = vsel %vm1114_vm1, %v3900_v39, 0  ;;  %v1146_v45 = vsel %vm1114_vm1, %v3906_v44, 0  ;;  %v2982_v47 = vld [vmem:[%s3788_s28 + $0x30] sm:$0xff]  ;;  %v1143_v48 = vsel %vm1114_vm1, %v3910_v46, 0  ;;  %v3915_v49 = vld [vmem:[#allocation3] sm:$0xff]  ;;  %v2983_v51 = vld [vmem:[%s3788_s28 + $0x38] sm:$0xff] }
 0x149   : > { %v2995_v31 = vld [vmem:[#allocation3 + $0x38] sm:$0xff]  ;;  %v1140_v50 = vsel %vm1114_vm1, %v3915_v49, 0  ;;  %s3540_s28 = smov 96   ;;  %s4777_s9 = sld [smem:[#allocation17_spill]] }
 0x14a   : > { %v2987_v24 = vld [vmem:[%s4771_s30 + $0x18] sm:$0xff]  ;;  %v2986_v25 = vld [vmem:[%s4771_s30 + $0x10] sm:$0xff]  ;;  %v2985_v26 = vld [vmem:[%s4771_s30 + $0x8] sm:$0xff]  ;;  %v1161_v32 = vsel %vm1114_vm1, %v2995_v31, 0  ;;  %1503 = vrot.lane.b32.xlu0 %v2993_v36, %s3540_s28  ;;  %s4778_s10 = sld [smem:[#allocation18_spill]] }
 0x14b   : > { %941 = vmatpush.bf16.xpose.msra.mxu0 %v2987_v24  ;;  %v2984_v27 = vld [vmem:[%s4771_s30] sm:$0xff]  ;;  %1163 = vmatpush.bf16.xpose.msra.mxu1 %v1161_v32  ;;  %s4773_s25 = smov %s4772_s14  ;;  %s4780_s8 = sld [smem:[#allocation35_spill]] }
 0x14c   : > { %1507 = vrot.lane.b32.xlu1 %v2995_v31, %s3540_s28  ;;  %1505 = vrot.lane.b32.xlu2 %v2994_v34, %s3540_s28 }
 0x14f   : > { %s2945_s16 = sshll.u32 %s4777_s9, 4 }
 0x150   : > { %s2946_s3 = sshll.u32 %s4778_s10, 5 }
 0x151   : > { %s2521_s5 = sadd.s32 %s2946_s3, %s2945_s16  ;;  %s3430_s10 = scalar_lea.hbm %s4780_s8, 512 }
 0x152   : > { %s2947_s19 = sshll.u32 %s2521_s5, 3 }
 0x153   : > { %942 = vmatpush.bf16.xpose.msra.mxu0 %v2986_v25  ;;  %1164 = vmatpush.bf16.xpose.msra.mxu1 %v1158_v35 }
 0x154   : > { %1499 = vrot.lane.b32.xlu2 %v2991_v41, %s3540_s28 }
 0x15b   : > { %943 = vmatpush.bf16.xpose.msra.mxu0 %v2985_v26  ;;  %1165 = vmatpush.bf16.xpose.msra.mxu1 %v1155_v37 }
 0x163   : > { %944 = vmatpush.bf16.xpose.msra.mxu0 %v2984_v27  ;;  %1166 = vmatpush.bf16.xpose.msra.mxu1 %v1152_v40 }
 0x16a   : > { %945 = vmatmul.bf16.vlgmr.msra.gmra.mxu0 %v2976_v28 }
 0x16b   : > { %1167 = vmatpush.bf16.xpose.msra.mxu1 %v1149_v42 }
 0x173   : > { %1168 = vmatpush.bf16.xpose.msra.mxu1 %v1146_v45 }
 0x17a   : > { %950 = vmatmul.bf16.gmra.mxu0 %v2977_v29 }
 0x17b   : > { %1169 = vmatpush.bf16.xpose.msra.mxu1 %v1143_v48 }
 0x183   : > { %1170 = vmatpush.bf16.xpose.msra.mxu1 %v1140_v50 }
 0x18a   : > { %955 = vmatmul.bf16.gmra.mxu0 %v2978_v30 }
 0x19a   : > { %960 = vmatmul.bf16.gmra.mxu0 %v2979_v33 }
 0x1aa   : > { %965 = vmatmul.bf16.gmra.mxu0 %v2980_v38 }
 0x1ba   : > { %970 = vmatmul.bf16.gmra.mxu0 %v2981_v43 }
 0x1ca   : > { %975 = vmatmul.bf16.gmra.mxu0 %v2982_v47 }
 0x1da   : > { %980 = vmatmul.bf16.gmra.mxu0 %v2983_v51 }
 0x1e7   : > { %v946_v52 = vpop.f32.mrf.mxu0 }
 0x1e8   : > { %v986_v53 = vpack.c.bf16 %v946_v52, %v946_v52 }
 0x1ea   : > { %v1050_v56 = vunpack.c.l.b16 %v986_v53 }
 0x1ef   : > { %v948_v54 = vpop.f32.mrf.mxu0 }
 0x1f0   : > { %v987_v55 = vpack.c.bf16 %v948_v54, %v948_v54 }
 0x1f2   : > { %v1051_v57 = vunpack.c.l.b16 %v987_v55 }
 0x1f4   : > { %v3920_v58 = vpack.c.b16 %v1051_v57, %v1050_v56 }
 0x1f6   : > { %2856 = vmatmul.msk.bf16.vlgmr.msra.gmra.mxu1 %vm1114_vm1, %v3920_v58 }
 0x1f7   : > { %v951_v59 = vpop.f32.mrf.mxu0 }
 0x1f8   : > { %v988_v60 = vpack.c.bf16 %v951_v59, %v951_v59  ;;  %v3003_v59 = vld [vmem:[#allocation4 + $0x38] sm:$0xff] }
 0x1f9   : > { %3020 = vmatpush.bf16.msra.mxu3 %v3003_v59  ;;  %1380 = vmatpush.bf16.msra.mxu2 %v3003_v59 }
 0x1fa   : > { %v1052_v63 = vunpack.c.l.b16 %v988_v60 }
 0x1ff   : > { %v953_v61 = vpop.f32.mrf.mxu0 }
 0x200   : > { %v989_v62 = vpack.c.bf16 %v953_v61, %v953_v61 }
 0x202   : > { %v1053_v0 = vunpack.c.l.b16 %v989_v62  ;;  %v3983_v62 = vld [vmem:[#allocation4 + $0x30] sm:$0xff] }
 0x203   : > { %3021 = vmatpush.bf16.msra.mxu3 %v3983_v62  ;;  %1381 = vmatpush.bf16.msra.mxu2 %v3983_v62 }
 0x204   : > { %v3924_v1 = vpack.c.b16 %v1053_v0, %v1052_v63  ;;  %v3001_v63 = vld [vmem:[#allocation4 + $0x28] sm:$0xff] }
 0x206   : > { %2857 = vmatmul.msk.bf16.gmra.mxu1 %vm1114_vm1, %v3924_v1 }
 0x207   : > { %v956_v2 = vpop.f32.mrf.mxu0  ;;  %3022 = vmatpush.bf16.msra.mxu3 %v3001_v63  ;;  %1382 = vmatpush.bf16.msra.mxu2 %v3001_v63 }
 0x208   : > { %v990_v3 = vpack.c.bf16 %v956_v2, %v956_v2  ;;  %v3000_v2 = vld [vmem:[#allocation4 + $0x20] sm:$0xff] }
 0x20a   : > { %v1054_v6 = vunpack.c.l.b16 %v990_v3  ;;  %v3991_v3 = vld [vmem:[#allocation4 + $0x18] sm:$0xff] }
 0x20b   : > { %3023 = vmatpush.bf16.msra.mxu3 %v3000_v2  ;;  %1383 = vmatpush.bf16.msra.mxu2 %v3000_v2 }
 0x20f   : > { %v958_v4 = vpop.f32.mrf.mxu0  ;;  %3024 = vmatpush.bf16.msra.mxu3 %v3991_v3  ;;  %1384 = vmatpush.bf16.msra.mxu2 %v3991_v3 }
 0x210   : > { %v991_v5 = vpack.c.bf16 %v958_v4, %v958_v4 }
 0x212   : > { %v1055_v7 = vunpack.c.l.b16 %v991_v5  ;;  %v3997_v5 = vld [vmem:[#allocation4 + $0x10] sm:$0xff] }
 0x213   : > { %3025 = vmatpush.bf16.msra.mxu3 %v3997_v5  ;;  %1385 = vmatpush.bf16.msra.mxu2 %v3997_v5 }
 0x214   : > { %v3932_v8 = vpack.c.b16 %v1055_v7, %v1054_v6  ;;  %v4003_v6 = vld [vmem:[#allocation4 + $0x8] sm:$0xff]  ;;  %v1508_v7 = vpop.permute.xlu1 %1507 }
 0x216   : > { %2858 = vmatmul.msk.bf16.gmra.mxu1 %vm1114_vm1, %v3932_v8 }
 0x217   : > { %v961_v9 = vpop.f32.mrf.mxu0  ;;  %3026 = vmatpush.bf16.msra.mxu3 %v4003_v6  ;;  %1386 = vmatpush.bf16.msra.mxu2 %v4003_v6 }
 0x218   : > { %v992_v10 = vpack.c.bf16 %v961_v9, %v961_v9  ;;  %v4008_v9 = vld [vmem:[#allocation4] sm:$0xff] }
 0x21a   : > { %v1056_v13 = vunpack.c.l.b16 %v992_v10  ;;  %v1555_v10 = vsel %vm1114_vm1, %v1508_v7, 0 }
 0x21b   : > { %3027 = vmatpush.bf16.msra.mxu3 %v4008_v9  ;;  %1387 = vmatpush.bf16.msra.mxu2 %v4008_v9 }
 0x21f   : > { %v963_v11 = vpop.f32.mrf.mxu0  ;;  %1557 = vmatpush.bf16.xpose.msrb.mxu3 %v1555_v10 }
 0x220   : > { %v993_v12 = vpack.c.bf16 %v963_v11, %v963_v11 }
 0x222   : > { %v1057_v14 = vunpack.c.l.b16 %v993_v12  ;;  %v1504_v12 = vpop.permute.xlu0 %1503 }
 0x224   : > { %v3936_v15 = vpack.c.b16 %v1057_v14, %v1056_v13  ;;  %v1549_v13 = vsel %vm1114_vm1, %v1504_v12, 0 }
 0x226   : > { %2859 = vmatmul.msk.bf16.gmra.mxu1 %vm1114_vm1, %v3936_v15 }
 0x227   : > { %v966_v16 = vpop.f32.mrf.mxu0 }
 0x228   : > { %v994_v17 = vpack.c.bf16 %v966_v16, %v966_v16 }
 0x22a   : > { %v1058_v20 = vunpack.c.l.b16 %v994_v17 }
 0x22f   : > { %v968_v18 = vpop.f32.mrf.mxu0 }
 0x230   : > { %v995_v19 = vpack.c.bf16 %v968_v18, %v968_v18 }
 0x232   : > { %v1059_v21 = vunpack.c.l.b16 %v995_v19 }
 0x234   : > { %v3940_v22 = vpack.c.b16 %v1059_v21, %v1058_v20 }
 0x236   : > { %2860 = vmatmul.msk.bf16.gmra.mxu1 %vm1114_vm1, %v3940_v22 }
 0x237   : > { %v971_v23 = vpop.f32.mrf.mxu0 }
 0x238   : > { %v996_v24 = vpack.c.bf16 %v971_v23, %v971_v23 }
 0x23a   : > { %v1060_v27 = vunpack.c.l.b16 %v996_v24 }
 0x23f   : > { %v973_v25 = vpop.f32.mrf.mxu0 }
 0x240   : > { %v997_v26 = vpack.c.bf16 %v973_v25, %v973_v25 }
 0x242   : > { %v1061_v28 = vunpack.c.l.b16 %v997_v26 }
 0x244   : > { %v3944_v29 = vpack.c.b16 %v1061_v28, %v1060_v27 }
 0x246   : > { %2861 = vmatmul.msk.bf16.gmra.mxu1 %vm1114_vm1, %v3944_v29 }
 0x247   : > { %v976_v30 = vpop.f32.mrf.mxu0 }
 0x248   : > { %v998_v31 = vpack.c.bf16 %v976_v30, %v976_v30 }
 0x24a   : > { %v1062_v34 = vunpack.c.l.b16 %v998_v31 }
 0x24f   : > { %v978_v32 = vpop.f32.mrf.mxu0 }
 0x250   : > { %v999_v33 = vpack.c.bf16 %v978_v32, %v978_v32 }
 0x252   : > { %v1063_v35 = vunpack.c.l.b16 %v999_v33 }
 0x254   : > { %v3948_v36 = vpack.c.b16 %v1063_v35, %v1062_v34 }
 0x256   : > { %2862 = vmatmul.msk.bf16.gmra.mxu1 %vm1114_vm1, %v3948_v36 }
 0x257   : > { %v981_v37 = vpop.f32.mrf.mxu0 }
 0x258   : > { %v1000_v38 = vpack.c.bf16 %v981_v37, %v981_v37 }
 0x25a   : > { %v1064_v41 = vunpack.c.l.b16 %v1000_v38 }
 0x25f   : > { %v983_v40 = vpop.f32.mrf.mxu0 }
 0x260   : > { %v1001_v42 = vpack.c.bf16 %v983_v40, %v983_v40 }
 0x262   : > { %v1065_v43 = vunpack.c.l.b16 %v1001_v42 }
 0x264   : > { %v3952_v45 = vpack.c.b16 %v1065_v43, %v1064_v41 }
 0x266   : > { %2863 = vmatmul.msk.bf16.gmra.mxu1 %vm1114_vm1, %v3952_v45 }
 0x273   : > { %v3956_v47 = vpop.f32.mrf.mxu1 }
 0x27b   : > { %v3958_v48 = vpop.f32.mrf.mxu1 }
 0x283   : > { %v3960_v50 = vpop.f32.mrf.mxu1 }
 0x28b   : > { %v3962_v51 = vpop.f32.mrf.mxu1 }
 0x293   : > { %v3964_v52 = vpop.f32.mrf.mxu1 }
 0x29b   : > { %v3966_v53 = vpop.f32.mrf.mxu1 }
 0x2a3   : > { %v3968_v54 = vpop.f32.mrf.mxu1 }
 0x2ab   : > { %v3970_v55 = vpop.f32.mrf.mxu1 }
 0x2b3   : > { %v3972_v56 = vpop.f32.mrf.mxu1 }
 0x2b4   : > { %1228 = vmax.xlane.f32.xlu0 %v3972_v56 }
 0x2bb   : > { %v3975_v57 = vpop.f32.mrf.mxu1 }
 0x2bc   : > { %1230 = vmax.xlane.f32.xlu0 %v3975_v57 }
 0x2c3   : > { %v3978_v60 = vpop.f32.mrf.mxu1 }
 0x2c4   : > { %1232 = vmax.xlane.f32.xlu1 %v3978_v60 }
 0x2cb   : > { %v3981_v61 = vpop.f32.mrf.mxu1 }
 0x2cc   : > { %1234 = vmax.xlane.f32.xlu2 %v3981_v61 }
 0x2d3   : > { %v3988_v0 = vpop.f32.mrf.mxu1 }
 0x2d4   : > { %1236 = vmax.xlane.f32.xlu2 %v3988_v0 }
 0x2db   : > { %v3995_v4 = vpop.f32.mrf.mxu1 }
 0x2dc   : > { %1238 = vmax.xlane.f32.xlu0 %v3995_v4 }
 0x2dd   : > { %1501 = vrot.lane.b32.xlu1 %v3900_v39, %s3540_s28  ;;  %v1506_v39 = vpop.permute.xlu2 %1505 }
 0x2de   : > { %v1552_v11 = vsel %vm1114_vm1, %v1506_v39, 0 }
 0x2df   : > { %1558 = vmatpush.bf16.xpose.msrb.mxu3 %v1552_v11 }
 0x2e5   : > { %v1500_v19 = vpop.permute.xlu2 %1499 }
 0x2e6   : > { %v1543_v38 = vsel %vm1114_vm1, %v1500_v19, 0 }
 0x2e7   : > { %1559 = vmatpush.bf16.xpose.msrb.mxu3 %v1549_v13 }
 0x2ec   : > { %1495 = vrot.lane.b32.xlu2 %v3910_v46, %s3540_s28  ;;  %v4025_v46 = vpop.f32.mrf.mxu1 }
 0x2f0   : > { %1497 = vrot.lane.b32.xlu0 %v3906_v44, %s3540_s28 }
 0x2f4   : > { %1493 = vrot.lane.b32.xlu2 %v3915_v49, %s3540_s28  ;;  %v4031_v44 = vpop.f32.mrf.mxu1 }
 0x2fc   : > { %1479 = vrot.lane.b32.xlu2 %v3924_v1, %s3540_s28 }
 0x304   : > { %1485 = vrot.lane.b32.xlu2 %v3940_v22, %s3540_s28 }
 0x307   : > { %1240 = vmax.xlane.f32.xlu1 %v4025_v46 }
 0x30c   : > { %1489 = vrot.lane.b32.xlu2 %v3948_v36, %s3540_s28 }
 0x314   : > { %1740 = vrot.lane.b32.xlu2 %v3003_v59, %s3540_s28 }
 0x31a   : > { %1242 = vmax.xlane.f32.xlu0 %v4031_v44 }
 0x31c   : > { %1734 = vrot.lane.b32.xlu2 %v3000_v2, %s3540_s28 }
 0x320   : > { %1483 = vrot.lane.b32.xlu1 %v3936_v15, %s3540_s28 }
 0x327   : > { %v1229_v49 = vpop.xlane.xlu0 %1228 }
 0x328   : > { %1736 = vrot.lane.b32.xlu1 %v3001_v63, %s3540_s28  ;;  %v1252_v1 = vsub.f32 %v3972_v56, %v1229_v49 }
 0x32a   : > { %v1276_v14 = vmul.f32 1.442695, %v1252_v1 }
 0x32c   : > { %3158 = vpow2.f32 %v1276_v14 }
 0x32e   : > { %1477 = vrot.lane.b32.xlu0 %v3920_v58, %s3540_s28 }
 0x32f   : > { %v1231_v16 = vpop.xlane.xlu0 %1230 }
 0x330   : > { %v1253_v17 = vsub.f32 %v3975_v57, %v1231_v16 }
 0x332   : > { %v1278_v18 = vmul.f32 1.442695, %v1253_v17  ;;  %v4044_v20 = vpop.eup %3158 }
 0x334   : > { %3160 = vpow2.f32 %v1278_v18 }
 0x336   : > { %1481 = vrot.lane.b32.xlu0 %v3932_v8, %s3540_s28 }
 0x337   : > { %v1233_v15 = vpop.xlane.xlu1 %1232 }
 0x338   : > { %v1254_v22 = vsub.f32 %v3978_v60, %v1233_v15 }
 0x33a   : > { %v4046_v21 = vpop.eup %3160  ;;  %v1280_v23 = vmul.f32 1.442695, %v1254_v22 }
 0x33b   : > { %v1328_v58 = vpack.c.bf16 %v4046_v21, %v4044_v20 }
 0x33c   : > { %3162 = vpow2.f32 %v1280_v23 }
 0x33d   : > { %1408 = vmatmul.bf16.vlgmr.msra.gmra.mxu3 %v1328_v58 }
 0x33e   : > { %1487 = vrot.lane.b32.xlu0 %v3944_v29, %s3540_s28 }
 0x33f   : > { %v1235_v24 = vpop.xlane.xlu2 %1234 }
 0x340   : > { %v1255_v25 = vsub.f32 %v3981_v61, %v1235_v24 }
 0x342   : > { %v1282_v8 = vmul.f32 1.442695, %v1255_v25  ;;  %v4057_v27 = vpop.eup %3162 }
 0x344   : > { %3164 = vpow2.f32 %v1282_v8 }
 0x345   : > { %1212 = vmax.xlane.f32.xlu2 %v3956_v47 }
 0x346   : > { %1491 = vrot.lane.b32.xlu0 %v3952_v45, %s3540_s28 }
 0x347   : > { %v1237_v26 = vpop.xlane.xlu2 %1236 }
 0x348   : > { %v1256_v30 = vsub.f32 %v3988_v0, %v1237_v26 }
 0x34a   : > { %v4059_v28 = vpop.eup %3164  ;;  %v1284_v32 = vmul.f32 1.442695, %v1256_v30 }
 0x34b   : > { %v1329_v29 = vpack.c.bf16 %v4059_v28, %v4057_v27 }
 0x34c   : > { %3166 = vpow2.f32 %v1284_v32 }
 0x34d   : > { %1413 = vmatmul.bf16.gmra.mxu3 %v1329_v29 }
 0x34e   : > { %1738 = vrot.lane.b32.xlu0 %v3983_v62, %s3540_s28 }
 0x34f   : > { %v1502_v31 = vpop.permute.xlu1 %1501  ;;  %v1496_v33 = vpop.permute.xlu2 %1495 }
 0x350   : > { %v1239_v34 = vpop.xlane.xlu0 %1238  ;;  %v1546_v35 = vsel %vm1114_vm1, %v1502_v31, 0  ;;  %v1537_v61 = vsel %vm1114_vm1, %v1496_v33, 0 }
 0x351   : > { %v1257_v36 = vsub.f32 %v3995_v4, %v1239_v34  ;;  %1560 = vmatpush.bf16.xpose.msrb.mxu3 %v1546_v35 }
 0x352   : > { %1214 = vmax.xlane.f32.xlu1 %v3958_v48  ;;  %v4072_v40 = vpop.eup %3166 }
 0x353   : > { %v1286_v37 = vmul.f32 1.442695, %v1257_v36 }
 0x355   : > { %3168 = vpow2.f32 %v1286_v37 }
 0x356   : > { %1732 = vrot.lane.b32.xlu0 %v3991_v3, %s3540_s28 }
 0x357   : > { %v1494_v41 = vpop.permute.xlu2 %1493 }
 0x358   : > { %v1534_v63 = vsel %vm1114_vm1, %v1494_v41, 0 }
 0x359   : > { %1561 = vmatpush.bf16.xpose.msrb.mxu3 %v1543_v38 }
 0x35b   : > { %v4074_v42 = vpop.eup %3168 }
 0x35c   : > { %v1330_v43 = vpack.c.bf16 %v4074_v42, %v4072_v40 }
 0x35e   : > { %1418 = vmatmul.bf16.gmra.mxu3 %v1330_v43  ;;  %1730 = vrot.lane.b32.xlu0 %v3997_v5, %s3540_s28 }
 0x35f   : > { %v1480_v57 = vpop.permute.xlu2 %1479 }
 0x362   : > { %v1498_v45 = vpop.permute.xlu0 %1497 }
 0x363   : > { %v1540_v56 = vsel %vm1114_vm1, %v1498_v45, 0 }
 0x364   : > { %1562 = vmatpush.bf16.xpose.msrb.mxu3 %v1540_v56 }
 0x366   : > { %1728 = vrot.lane.b32.xlu0 %v4003_v6, %s3540_s28 }
 0x367   : > { %v4083_v59 = vpop.permute.xlu2 %1485 }
 0x36c   : > { %1563 = vmatpush.bf16.xpose.msrb.mxu3 %v1537_v61 }
 0x36e   : > { %1726 = vrot.lane.b32.xlu0 %v4008_v9, %s3540_s28 }
 0x36f   : > { %v4087_v60 = vpop.permute.xlu2 %1489 }
 0x374   : > { %1564 = vmatpush.bf16.xpose.msrb.mxu3 %v1534_v63 }
 0x377   : > { %v1741_v62 = vpop.permute.xlu2 %1740 }
 0x378   : > { %1750 = vmatpush.bf16.msrb.mxu0 %v1741_v62  ;;  %3028 = vmatpush.bf16.msrb.mxu1 %v1741_v62 }
 0x37a   : > { %v1241_v0 = vpop.xlane.xlu1 %1240 }
 0x37b   : > { %v1258_v2 = vsub.f32 %v4025_v46, %v1241_v0 }
 0x37d   : > { %v1288_v3 = vmul.f32 1.442695, %v1258_v2 }
 0x37f   : > { %3170 = vpow2.f32 %v1288_v3  ;;  %v1735_v46 = vpop.permute.xlu2 %1734 }
 0x385   : > { %v4093_v7 = vpop.eup %3170 }
 0x38d   : > { %v1243_v4 = vpop.xlane.xlu0 %1242 }
 0x38e   : > { %v1259_v5 = vsub.f32 %v4031_v44, %v1243_v4 }
 0x390   : > { %v1290_v6 = vmul.f32 1.442695, %v1259_v5 }
 0x392   : > { %3172 = vpow2.f32 %v1290_v6  ;;  %v1484_v13 = vpop.permute.xlu1 %1483 }
 0x398   : > { %v4095_v9 = vpop.eup %3172  ;;  %1226 = vmax.xlane.f32.xlu0 %v3970_v55 }
 0x399   : > { %v1331_v10 = vpack.c.bf16 %v4095_v9, %v4093_v7 }
 0x39a   : > { %v1737_v49 = vpop.permute.xlu1 %1736 }
 0x39b   : > { %1423 = vmatmul.bf16.gmra.mxu3 %v1331_v10 }
 0x3a0   : > { %v1478_v39 = vpop.permute.xlu0 %1477 }
 0x3a8   : > { %v1482_v11 = vpop.permute.xlu0 %1481 }
 0x3ab   : > { %2896 = vmatmul.msk.bf16.vlgmr.msrb.gmra.mxu3 %vm1114_vm1, %v1478_v39 }
 0x3b0   : > { %v1488_v12 = vpop.permute.xlu0 %1487 }
 0x3b8   : > { %v1492_v44 = vpop.permute.xlu0 %1491  ;;  %v1213_v1 = vpop.xlane.xlu2 %1212 }
 0x3b9   : > { %v1244_v14 = vsub.f32 %v3956_v47, %v1213_v1 }
 0x3bb   : > { %2897 = vmatmul.msk.bf16.gmra.mxu3 %vm1114_vm1, %v1480_v57  ;;  %v1260_v17 = vmul.f32 1.442695, %v1244_v14 }
 0x3bd   : > { %3174 = vpow2.f32 %v1260_v17 }
 0x3c0   : > { %v1739_v16 = vpop.permute.xlu0 %1738  ;;  %v4106_v8 = vpop.f32.mrf.mxu3 }
 0x3c1   : > { %1751 = vmatpush.bf16.msrb.mxu0 %v1739_v16  ;;  %3029 = vmatpush.bf16.msrb.mxu1 %v1739_v16 }
 0x3c3   : > { %v3175_v47 = vpop.eup %3174 }
 0x3c5   : > { %v1215_v18 = vpop.xlane.xlu1 %1214  ;;  %1752 = vmatpush.bf16.msrb.mxu0 %v1737_v49  ;;  %3030 = vmatpush.bf16.msrb.mxu1 %v1737_v49 }
 0x3c6   : > { %v1245_v19 = vsub.f32 %v3958_v48, %v1215_v18 }
 0x3c8   : > { %v1262_v15 = vmul.f32 1.442695, %v1245_v19  ;;  %v1733_v22 = vpop.permute.xlu0 %1732  ;;  %v4110_v26 = vpop.f32.mrf.mxu3 }
 0x3c9   : > { %1753 = vmatpush.bf16.msrb.mxu0 %v1735_v46  ;;  %3031 = vmatpush.bf16.msrb.mxu1 %v1735_v46 }
 0x3ca   : > { %3176 = vpow2.f32 %v1262_v15 }
 0x3cb   : > { %2898 = vmatmul.msk.bf16.gmra.mxu3 %vm1114_vm1, %v1482_v11 }
 0x3cd   : > { %1754 = vmatpush.bf16.msrb.mxu0 %v1733_v22  ;;  %3032 = vmatpush.bf16.msrb.mxu1 %v1733_v22 }
 0x3d0   : > { %v3177_v58 = vpop.eup %3176  ;;  %v1731_v24 = vpop.permute.xlu0 %1730 }
 0x3d1   : > { %v1324_v23 = vpack.c.bf16 %v3177_v58, %v3175_v47  ;;  %1755 = vmatpush.bf16.msrb.mxu0 %v1731_v24  ;;  %3033 = vmatpush.bf16.msrb.mxu1 %v1731_v24  ;;  %v4112_v29 = vpop.f32.mrf.mxu3 }
 0x3d3   : > { %1388 = vmatmul.bf16.vlgmr.msra.gmra.mxu2 %v1324_v23 }
 0x3d8   : > { %v1729_v48 = vpop.permute.xlu0 %1728 }
 0x3d9   : > { %1756 = vmatpush.bf16.msrb.mxu0 %v1729_v48  ;;  %3034 = vmatpush.bf16.msrb.mxu1 %v1729_v48  ;;  %v4115_v30 = vpop.f32.mrf.mxu3 }
 0x3db   : > { %2899 = vmatmul.msk.bf16.gmra.mxu3 %vm1114_vm1, %v1484_v13 }
 0x3e0   : > { %v1727_v25 = vpop.permute.xlu0 %1726 }
 0x3e1   : > { %1757 = vmatpush.bf16.msrb.mxu0 %v1727_v25  ;;  %3035 = vmatpush.bf16.msrb.mxu1 %v1727_v25  ;;  %v4119_v31 = vpop.f32.mrf.mxu3 }
 0x3e9   : > { %v4121_v32 = vpop.f32.mrf.mxu3 }
 0x3eb   : > { %2900 = vmatmul.msk.bf16.gmra.mxu3 %vm1114_vm1, %v4083_v59 }
 0x3fb   : > { %2901 = vmatmul.msk.bf16.gmra.mxu3 %vm1114_vm1, %v1488_v12 }
 0x40b   : > { %2902 = vmatmul.msk.bf16.gmra.mxu3 %vm1114_vm1, %v4087_v60  ;;  %v1227_v6 = vpop.xlane.xlu0 %1226 }
 0x41b   : > { %2903 = vmatmul.msk.bf16.gmra.mxu3 %vm1114_vm1, %v1492_v44 }
 0x41e   : > { %v4124_v33 = vpop.f32.mrf.mxu3 }
 0x426   : > { %v4126_v34 = vpop.f32.mrf.mxu3 }
 0x42e   : > { %v1566_v35 = vpop.f32.mrf.mxu3 }
 0x42f   : > { %1606 = vmax.xlane.f32.xlu1 %v1566_v35 }
 0x436   : > { %v1568_v36 = vpop.f32.mrf.mxu3 }
 0x437   : > { %1218 = vmax.xlane.f32.xlu1 %v3962_v51  ;;  %1608 = vmax.xlane.f32.xlu2 %v1568_v36 }
 0x43e   : > { %v1571_v37 = vpop.f32.mrf.mxu3 }
 0x43f   : > { %1220 = vmax.xlane.f32.xlu1 %v3964_v52  ;;  %1216 = vmax.xlane.f32.xlu2 %v3960_v50 }
 0x440   : > { %1610 = vmax.xlane.f32.xlu0 %v1571_v37 }
 0x446   : > { %v4131_v38 = vpop.f32.mrf.mxu3 }
 0x447   : > { %1292 = vadd.xlane.f32.xlu1 %v3175_v47  ;;  %1222 = vmax.xlane.f32.xlu2 %v3966_v53 }
 0x44e   : > { %v4134_v41 = vpop.f32.mrf.mxu3 }
 0x44f   : > { %1224 = vmax.xlane.f32.xlu2 %v3968_v54  ;;  %1612 = vmax.xlane.f32.xlu1 %v4131_v38 }
 0x456   : > { %v4138_v43 = vpop.f32.mrf.mxu3 }
 0x457   : > { %1614 = vmax.xlane.f32.xlu2 %v4134_v41 }
 0x45e   : > { %v4141_v45 = vpop.f32.mrf.mxu3 }
 0x45f   : > { %1294 = vadd.xlane.f32.xlu2 %v3177_v58 }
 0x466   : > { %v4143_v56 = vpop.f32.mrf.mxu3 }
 0x467   : > { %1618 = vmax.xlane.f32.xlu2 %v4141_v45  ;;  %1620 = vmax.xlane.f32.xlu0 %v4143_v56 }
 0x46e   : > { %v4147_v57 = vpop.f32.mrf.mxu3 }
 0x46f   : > { %1622 = vmax.xlane.f32.xlu0 %v4147_v57 }
 0x476   : > { %v4150_v59 = vpop.f32.mrf.mxu3 }
 0x477   : > { %1318 = vadd.xlane.f32.xlu0 %v4074_v42 }
 0x47e   : > { %v4153_v60 = vpop.f32.mrf.mxu3 }
 0x486   : > { %v4155_v61 = vpop.f32.mrf.mxu3 }
 0x48e   : > { %v4157_v62 = vpop.f32.mrf.mxu3 }
 0x48f   : > { %1630 = vmax.xlane.f32.xlu0 %v4157_v62 }
 0x496   : > { %v4160_v63 = vpop.f32.mrf.mxu3 }
 0x49e   : > { %v4162_v0 = vpop.f32.mrf.mxu3 }
 0x4a2   : > { %v1607_v2 = vpop.xlane.xlu1 %1606 }
 0x4a3   : > { %v1638_v4 = vsub.f32 %v1566_v35, %v1607_v2 }
 0x4a5   : > { %v1654_v10 = vmul.f32 1.442695, %v1638_v4 }
 0x4a6   : > { %v4164_v3 = vpop.f32.mrf.mxu3 }
 0x4a7   : > { %1636 = vmax.xlane.f32.xlu0 %v4164_v3  ;;  %3178 = vpow2.f32 %v1654_v10 }
 0x4aa   : > { %v1219_v5 = vpop.xlane.xlu1 %1218  ;;  %v1609_v42 = vpop.xlane.xlu2 %1608 }
 0x4ab   : > { %v1639_v39 = vsub.f32 %v1568_v36, %v1609_v42  ;;  %v1247_v12 = vsub.f32 %v3962_v51, %v1219_v5  ;;  %v1251_v51 = vsub.f32 %v3970_v55, %v1227_v6 }
 0x4ad   : > { %v1656_v11 = vmul.f32 1.442695, %v1639_v39  ;;  %v1266_v13 = vmul.f32 1.442695, %v1247_v12  ;;  %v4170_v17 = vpop.eup %3178  ;;  %v1274_v58 = vmul.f32 1.442695, %v1251_v51 }
 0x4af   : > { %3180 = vpow2.f32 %v1656_v11 }
 0x4b0   : > { %3182 = vpow2.f32 %v1266_v13 }
 0x4b2   : > { %v1221_v46 = vpop.xlane.xlu1 %1220  ;;  %v1217_v44 = vpop.xlane.xlu2 %1216 }
 0x4b3   : > { %v1248_v49 = vsub.f32 %v3964_v52, %v1221_v46  ;;  %v1246_v1 = vsub.f32 %v3960_v50, %v1217_v44  ;;  %v1611_v14 = vpop.xlane.xlu0 %1610 }
 0x4b4   : > { %v1640_v16 = vsub.f32 %v1571_v37, %v1611_v14  ;;  %v1389_v37 = vpop.f32.mrf.mxu2 }
 0x4b5   : > { %v1268_v18 = vmul.f32 1.442695, %v1248_v49  ;;  %v1264_v19 = vmul.f32 1.442695, %v1246_v1  ;;  %v4172_v15 = vpop.eup %3180 }
 0x4b6   : > { %v1658_v22 = vmul.f32 1.442695, %v1640_v16  ;;  %v1718_v47 = vpack.c.bf16 %v4172_v15, %v4170_v17  ;;  %v3183_v23 = vpop.eup %3182 }
 0x4b7   : > { %3184 = vpow2.f32 %v1268_v18 }
 0x4b8   : > { %3186 = vpow2.f32 %v1264_v19  ;;  %1758 = vmatmul.bf16.vlgmr.msrb.gmra.mxu0 %v1718_v47 }
 0x4b9   : > { %3188 = vpow2.f32 %v1658_v22 }
 0x4ba   : > { %v1293_v50 = vpop.xlane.xlu1 %1292  ;;  %v1223_v52 = vpop.xlane.xlu2 %1222 }
 0x4bb   : > { %3190 = vrcp.f32 %v1293_v50  ;;  %v1249_v25 = vsub.f32 %v3966_v53, %v1223_v52 }
 0x4bc   : > { %3192 = vpow2.f32 %v1274_v58  ;;  %v1391_v14 = vpop.f32.mrf.mxu2 }
 0x4bd   : > { %v3185_v24 = vpop.eup %3184  ;;  %v1270_v2 = vmul.f32 1.442695, %v1249_v25 }
 0x4be   : > { %v3187_v48 = vpop.eup %3186  ;;  %1300 = vadd.xlane.f32.xlu2 %v3185_v24 }
 0x4bf   : > { %v3189_v35 = vpop.eup %3188  ;;  %1296 = vadd.xlane.f32.xlu1 %v3187_v48  ;;  %v1325_v55 = vpack.c.bf16 %v3183_v23, %v3187_v48  ;;  %3194 = vpow2.f32 %v1270_v2 }
 0x4c0   : > { %1690 = vadd.xlane.f32.xlu0 %v3189_v35 }
 0x4c1   : > { %v3191_v36 = vpop.eup %3190  ;;  %1393 = vmatmul.bf16.gmra.mxu2 %v1325_v55 }
 0x4c2   : > { %v1225_v4 = vpop.xlane.xlu2 %1224  ;;  %v1613_v5 = vpop.xlane.xlu1 %1612  ;;  %v1445_v42 = vmul.f32 %v3191_v36, %v1389_v37 }
 0x4c3   : > { %v1641_v6 = vsub.f32 %v4131_v38, %v1613_v5  ;;  %v3193_v10 = vpop.eup %3192  ;;  %v1250_v13 = vsub.f32 %v3968_v54, %v1225_v4 }
 0x4c4   : > { %1461 = vst.msk [vmem:[#allocation2] sm:$0xff] %vm1114_vm1, %v1445_v42 }
 0x4c5   : > { %v1660_v39 = vmul.f32 1.442695, %v1641_v6  ;;  %v3195_v11 = vpop.eup %3194  ;;  %v1272_v38 = vmul.f32 1.442695, %v1250_v13 }
 0x4c6   : > { %1306 = vadd.xlane.f32.xlu2 %v3193_v10  ;;  %v1326_v46 = vpack.c.bf16 %v3195_v11, %v3185_v24 }
 0x4c7   : > { %1298 = vadd.xlane.f32.xlu1 %v3183_v23  ;;  %3196 = vpow2.f32 %v1660_v39 }
 0x4ca   : > { %v1615_v53 = vpop.xlane.xlu2 %1614 }
 0x4cb   : > { %v1642_v22 = vsub.f32 %v4134_v41, %v1615_v53 }
 0x4cd   : > { %v3197_v12 = vpop.eup %3196  ;;  %v1662_v47 = vmul.f32 1.442695, %v1642_v22 }
 0x4ce   : > { %1310 = vadd.xlane.f32.xlu2 %v4046_v21  ;;  %v1719_v44 = vpack.c.bf16 %v3197_v12, %v3189_v35 }
 0x4cf   : > { %1616 = vmax.xlane.f32.xlu1 %v4138_v43 }
 0x4d0   : > { %1763 = vmatmul.bf16.gmra.mxu0 %v1719_v44 }
 0x4d1   : > { %1398 = vmatmul.bf16.gmra.mxu2 %v1326_v46 }
 0x4d2   : > { %v1295_v49 = vpop.xlane.xlu2 %1294 }
 0x4d3   : > { %3198 = vrcp.f32 %v1295_v49 }
 0x4d4   : > { %3200 = vpow2.f32 %v1272_v38 }
 0x4d6   : > { %1628 = vmax.xlane.f32.xlu2 %v4155_v61 }
 0x4d7   : > { %1302 = vadd.xlane.f32.xlu1 %v3195_v11 }
 0x4d9   : > { %v3199_v1 = vpop.eup %3198 }
 0x4da   : > { %v1621_v16 = vpop.xlane.xlu0 %1620  ;;  %v1446_v18 = vmul.f32 %v3199_v1, %v1391_v14  ;;  %v3201_v54 = vpop.eup %3200 }
 0x4db   : > { %v1327_v21 = vpack.c.bf16 %v3193_v10, %v3201_v54  ;;  %v1619_v24 = vpop.xlane.xlu2 %1618 }
 0x4dc   : > { %1462 = vst.msk [vmem:[#allocation2 + $0x8] sm:$0xff] %vm1114_vm1, %v1446_v18  ;;  %v1644_v5 = vsub.f32 %v4141_v45, %v1619_v24 }
 0x4de   : > { %1316 = vadd.xlane.f32.xlu2 %v4072_v40  ;;  %v1666_v53 = vmul.f32 1.442695, %v1644_v5 }
 0x4df   : > { %1304 = vadd.xlane.f32.xlu1 %v3201_v54 }
 0x4e1   : > { %1403 = vmatmul.bf16.gmra.mxu2 %v1327_v21 }
 0x4e2   : > { %v4186_v19 = vpop.xlane.xlu0 %1622 }
 0x4e3   : > { %v1646_v45 = vsub.f32 %v4147_v57, %v4186_v19 }
 0x4e5   : > { %v1670_v38 = vmul.f32 1.442695, %v1646_v45 }
 0x4e6   : > { %1634 = vmax.xlane.f32.xlu2 %v4162_v0 }
 0x4e7   : > { %1308 = vadd.xlane.f32.xlu1 %v4044_v20 }
 0x4ea   : > { %v1319_v51 = vpop.xlane.xlu0 %1318 }
 0x4eb   : > { %3202 = vrcp.f32 %v1319_v51 }
 0x4ec   : > { %3204 = vpow2.f32 %v1662_v47 }
 0x4ee   : > { %1688 = vadd.xlane.f32.xlu2 %v4172_v15 }
 0x4ef   : > { %1312 = vadd.xlane.f32.xlu1 %v4057_v27  ;;  %v1645_v27 = vsub.f32 %v4143_v56, %v1621_v16 }
 0x4f1   : > { %v3203_v40 = vpop.eup %3202  ;;  %v1668_v15 = vmul.f32 1.442695, %v1645_v27 }
 0x4f2   : > { %v1458_v50 = vmul.f32 %v3203_v40, %v4121_v32  ;;  %v3205_v52 = vpop.eup %3204 }
 0x4f4   : > { %1474 = vst.msk [vmem:[#allocation2 + $0x68] sm:$0xff] %vm1114_vm1, %v1458_v50 }
 0x4f6   : > { %1694 = vadd.xlane.f32.xlu2 %v3205_v52 }
 0x4f7   : > { %1624 = vmax.xlane.f32.xlu1 %v4150_v59 }
 0x4ff   : > { %1314 = vadd.xlane.f32.xlu1 %v4059_v28 }
 0x502   : > { %v4199_v20 = vpop.xlane.xlu0 %1630 }
 0x507   : > { %1626 = vmax.xlane.f32.xlu1 %v4153_v60 }
 0x50f   : > { %1632 = vmax.xlane.f32.xlu1 %v4160_v63 }
 0x517   : > { %1686 = vadd.xlane.f32.xlu1 %v4170_v17 }
 0x51a   : > { %v1637_v41 = vpop.xlane.xlu0 %1636 }
 0x51b   : > { %v1653_v32 = vsub.f32 %v4164_v3, %v1637_v41 }
 0x51d   : > { %v1684_v58 = vmul.f32 1.442695, %v1653_v32 }
 0x51f   : > { %3206 = vpow2.f32 %v1684_v58  ;;  %1692 = vadd.xlane.f32.xlu1 %v3197_v12 }
 0x520   : > { %3208 = vpow2.f32 %v1668_v15 }
 0x525   : > { %v4204_v23 = vpop.eup %3206 }
 0x526   : > { %v4206_v28 = vpop.eup %3208  ;;  %1716 = vadd.xlane.f32.xlu2 %v4204_v23 }
 0x527   : > { %1700 = vadd.xlane.f32.xlu1 %v4206_v28 }
 0x531   : > { %v1301_v17 = vpop.xlane.xlu2 %1300 }
 0x532   : > { %v1297_v48 = vpop.xlane.xlu1 %1296 }
 0x533   : > { %3210 = vrcp.f32 %v1297_v48 }
 0x539   : > { %v4210_v56 = vpop.xlane.xlu2 %1306  ;;  %v3211_v36 = vpop.eup %3210 }
 0x53a   : > { %v1299_v25 = vpop.xlane.xlu1 %1298 }
 0x541   : > { %v1311_v3 = vpop.xlane.xlu2 %1310 }
 0x542   : > { %v1617_v35 = vpop.xlane.xlu1 %1616  ;;  %3212 = vrcp.f32 %v1311_v3 }
 0x543   : > { %v1643_v55 = vsub.f32 %v4138_v43, %v1617_v35  ;;  %3214 = vrcp.f32 %v1299_v25 }
 0x544   : > { %v1394_v37 = vpop.f32.mrf.mxu2 }
 0x545   : > { %v1664_v2 = vmul.f32 1.442695, %v1643_v55  ;;  %v1447_v4 = vmul.f32 %v3211_v36, %v1394_v37 }
 0x547   : > { %3216 = vpow2.f32 %v1664_v2  ;;  %1463 = vst.msk [vmem:[#allocation2 + $0x10] sm:$0xff] %vm1114_vm1, %v1447_v4 }
 0x548   : > { %v3213_v42 = vpop.eup %3212  ;;  %3218 = vrcp.f32 %v1301_v17 }
 0x549   : > { %v4215_v6 = vpop.xlane.xlu2 %1628  ;;  %v1454_v10 = vmul.f32 %v3213_v42, %v4110_v26  ;;  %v3215_v43 = vpop.eup %3214  ;;  %3220 = vpow2.f32 %v1666_v53  ;;  %v1650_v53 = vsub.f32 %v4157_v62, %v4199_v20 }
 0x54a   : > { %v1303_v39 = vpop.xlane.xlu1 %1302  ;;  %v1649_v3 = vsub.f32 %v4155_v61, %v4215_v6  ;;  %v1759_v6 = vpop.f32.mrf.mxu0 }
 0x54b   : > { %1470 = vst.msk [vmem:[#allocation2 + $0x48] sm:$0xff] %vm1114_vm1, %v1454_v10 }
 0x54c   : > { %v1396_v11 = vpop.f32.mrf.mxu2 }
 0x54d   : > { %v3217_v12 = vpop.eup %3216  ;;  %v1448_v13 = vmul.f32 %v3215_v43, %v1396_v11 }
 0x54e   : > { %1696 = vadd.xlane.f32.xlu0 %v3217_v12  ;;  %v1720_v46 = vpack.c.bf16 %v3217_v12, %v3205_v52  ;;  %v3219_v49 = vpop.eup %3218 }
 0x54f   : > { %1464 = vst.msk [vmem:[#allocation2 + $0x18] sm:$0xff] %vm1114_vm1, %v1448_v13  ;;  %v3221_v14 = vpop.eup %3220  ;;  %v1691_v13 = vpop.xlane.xlu0 %1690 }
 0x550   : > { %1768 = vmatmul.bf16.gmra.mxu0 %v1720_v46  ;;  %v1721_v47 = vpack.c.bf16 %v4206_v28, %v3221_v14 }
 0x551   : > { %v1317_v44 = vpop.xlane.xlu2 %1316 }
 0x552   : > { %v1305_v26 = vpop.xlane.xlu1 %1304  ;;  %3222 = vrcp.f32 %v1317_v44 }
 0x553   : > { %3224 = vrcp.f32 %v1303_v39 }
 0x554   : > { %v1399_v1 = vpop.f32.mrf.mxu2  ;;  %3226 = vpow2.f32 %v1670_v38 }
 0x555   : > { %v1449_v16 = vmul.f32 %v3219_v49, %v1399_v1 }
 0x556   : > { %1698 = vadd.xlane.f32.xlu0 %v3221_v14 }
 0x557   : > { %1465 = vst.msk [vmem:[#allocation2 + $0x20] sm:$0xff] %vm1114_vm1, %v1449_v16 }
 0x558   : > { %v3223_v18 = vpop.eup %3222 }
 0x559   : > { %v1457_v54 = vmul.f32 %v3223_v18, %v4119_v31  ;;  %v3225_v21 = vpop.eup %3224  ;;  %v1635_v43 = vpop.xlane.xlu2 %1634 }
 0x55a   : > { %v1309_v57 = vpop.xlane.xlu1 %1308  ;;  %v3227_v22 = vpop.eup %3226  ;;  %v1652_v12 = vsub.f32 %v4162_v0, %v1635_v43 }
 0x55b   : > { %3228 = vrcp.f32 %v1309_v57  ;;  %1473 = vst.msk [vmem:[#allocation2 + $0x60] sm:$0xff] %vm1114_vm1, %v1457_v54 }
 0x55c   : > { %v1401_v19 = vpop.f32.mrf.mxu2  ;;  %3230 = vrcp.f32 %v1305_v26  ;;  %v1682_v44 = vmul.f32 1.442695, %v1652_v12 }
 0x55d   : > { %v1450_v51 = vmul.f32 %v3225_v21, %v1401_v19 }
 0x55e   : > { %1702 = vadd.xlane.f32.xlu0 %v3227_v22 }
 0x55f   : > { %1466 = vst.msk [vmem:[#allocation2 + $0x28] sm:$0xff] %vm1114_vm1, %v1450_v51 }
 0x560   : > { %1773 = vmatmul.bf16.gmra.mxu0 %v1721_v47 }
 0x561   : > { %v3229_v40 = vpop.eup %3228  ;;  %v1689_v18 = vpop.xlane.xlu2 %1688 }
 0x562   : > { %v1313_v50 = vpop.xlane.xlu1 %1312  ;;  %v1453_v52 = vmul.f32 %v3229_v40, %v4106_v8  ;;  %v3231_v31 = vpop.eup %3230 }
 0x563   : > { %3232 = vrcp.f32 %v1313_v50 }
 0x564   : > { %v1404_v27 = vpop.f32.mrf.mxu2  ;;  %1469 = vst.msk [vmem:[#allocation2 + $0x40] sm:$0xff] %vm1114_vm1, %v1453_v52  ;;  %3234 = vrcp.f32 %v4210_v56 }
 0x565   : > { %v1451_v41 = vmul.f32 %v3231_v31, %v1404_v27 }
 0x567   : > { %1467 = vst.msk [vmem:[#allocation2 + $0x30] sm:$0xff] %vm1114_vm1, %v1451_v41 }
 0x569   : > { %v3233_v32 = vpop.eup %3232 }
 0x56a   : > { %v1625_v15 = vpop.xlane.xlu1 %1624  ;;  %v1455_v58 = vmul.f32 %v3233_v32, %v4112_v29  ;;  %v3235_v24 = vpop.eup %3234 }
 0x56b   : > { %v1647_v28 = vsub.f32 %v4150_v59, %v1625_v15  ;;  %v1676_v59 = vmul.f32 1.442695, %v1649_v3 }
 0x56c   : > { %v1406_v17 = vpop.f32.mrf.mxu2  ;;  %1471 = vst.msk [vmem:[#allocation2 + $0x50] sm:$0xff] %vm1114_vm1, %v1455_v58 }
 0x56d   : > { %v1672_v8 = vmul.f32 1.442695, %v1647_v28  ;;  %v1452_v48 = vmul.f32 %v3235_v24, %v1406_v17 }
 0x56f   : > { %3236 = vpow2.f32 %v1672_v8  ;;  %1468 = vst.msk [vmem:[#allocation2 + $0x38] sm:$0xff] %vm1114_vm1, %v1452_v48 }
 0x572   : > { %v1315_v25 = vpop.xlane.xlu1 %1314 }
 0x573   : > { %3238 = vrcp.f32 %v1315_v25 }
 0x574   : > { %3240 = vpow2.f32 %v1676_v59 }
 0x575   : > { %v3237_v56 = vpop.eup %3236 }
 0x576   : > { %1704 = vadd.xlane.f32.xlu1 %v3237_v56  ;;  %v1722_v35 = vpack.c.bf16 %v3237_v56, %v3227_v22  ;;  %v1695_v22 = vpop.xlane.xlu2 %1694 }
 0x578   : > { %1778 = vmatmul.bf16.gmra.mxu0 %v1722_v35 }
 0x579   : > { %v3239_v29 = vpop.eup %3238 }
 0x57a   : > { %v1627_v55 = vpop.xlane.xlu1 %1626  ;;  %v1456_v36 = vmul.f32 %v3239_v29, %v4115_v30  ;;  %v3241_v42 = vpop.eup %3240 }
 0x57b   : > { %v1648_v37 = vsub.f32 %v4153_v60, %v1627_v55  ;;  %v1678_v60 = vmul.f32 1.442695, %v1650_v53 }
 0x57c   : > { %1472 = vst.msk [vmem:[#allocation2 + $0x58] sm:$0xff] %vm1114_vm1, %v1456_v36 }
 0x57d   : > { %v1674_v2 = vmul.f32 1.442695, %v1648_v37 }
 0x57f   : > { %3242 = vpow2.f32 %v1674_v2 }
 0x582   : > { %v1633_v4 = vpop.xlane.xlu1 %1632 }
 0x583   : > { %v1651_v5 = vsub.f32 %v4160_v63, %v1633_v4  ;;  %v1761_v63 = vpop.f32.mrf.mxu0 }
 0x585   : > { %v3243_v61 = vpop.eup %3242  ;;  %v1680_v10 = vmul.f32 1.442695, %v1651_v5 }
 0x586   : > { %1706 = vadd.xlane.f32.xlu0 %v3243_v61  ;;  %v1723_v39 = vpack.c.bf16 %v3241_v42, %v3243_v61 }
 0x587   : > { %3244 = vpow2.f32 %v1680_v10 }
 0x588   : > { %1783 = vmatmul.bf16.vlgmr.msrb.gmra.mxu1 %v1723_v39 }
 0x58a   : > { %v1687_v30 = vpop.xlane.xlu1 %1686 }
 0x58b   : > { %3246 = vrcp.f32 %v1687_v30  ;;  %v1764_v26 = vpop.f32.mrf.mxu0 }
 0x58c   : > { %3248 = vpow2.f32 %v1678_v60 }
 0x58d   : > { %v3245_v11 = vpop.eup %3244  ;;  %3250 = vrcp.f32 %v1691_v13 }
 0x58e   : > { %1712 = vadd.xlane.f32.xlu1 %v3245_v11  ;;  %1708 = vadd.xlane.f32.xlu0 %v3241_v42  ;;  %3252 = vpow2.f32 %v1682_v44 }
 0x591   : > { %v3247_v46 = vpop.eup %3246 }
 0x592   : > { %v1815_v45 = vmul.f32 %v3247_v46, %v1759_v6  ;;  %v3249_v62 = vpop.eup %3248  ;;  %v1693_v49 = vpop.xlane.xlu1 %1692 }
 0x593   : > { %v1724_v20 = vpack.c.bf16 %v3245_v11, %v3249_v62  ;;  %v3251_v38 = vpop.eup %3250  ;;  %3254 = vrcp.f32 %v1693_v49  ;;  %v1766_v16 = vpop.f32.mrf.mxu0 }
 0x594   : > { %1847 = vrot.lane.b32.xlu2 %v1815_v45, %s3541_s4  ;;  %v1817_v1 = vmul.f32 %v3251_v38, %v1764_v26  ;;  %v3253_v0 = vpop.eup %3252  ;;  %3256 = vrcp.f32 %v1689_v18 }
 0x595   : > { %v1725_v57 = vpack.c.bf16 %v4204_v23, %v3253_v0  ;;  %3258 = vrcp.f32 %v1695_v22 }
 0x596   : > { %1710 = vadd.xlane.f32.xlu0 %v3249_v62 }
 0x598   : > { %1788 = vmatmul.bf16.gmra.mxu1 %v1724_v20 }
 0x599   : > { %v3255_v14 = vpop.eup %3254  ;;  %v4252_v17 = vpop.xlane.xlu2 %1716 }
 0x59a   : > { %v1818_v54 = vmul.f32 %v3255_v14, %v1766_v16  ;;  %v3257_v21 = vpop.eup %3256  ;;  %v1701_v41 = vpop.xlane.xlu1 %1700 }
 0x59b   : > { %v1816_v19 = vmul.f32 %v3257_v21, %v1761_v63  ;;  %v3259_v47 = vpop.eup %3258 }
 0x59c   : > { %1851 = vrot.lane.b32.xlu2 %v1817_v1, %s3541_s4 }
 0x59e   : > { %1714 = vadd.xlane.f32.xlu0 %v3253_v0 }
 0x5a7   : > { %1853 = vrot.lane.b32.xlu1 %v1818_v54, %s3541_s4 }
 0x5a8   : > { %1793 = vmatmul.bf16.gmra.mxu1 %v1725_v57 }
 0x5b2   : > { %1849 = vrot.lane.b32.xlu0 %v1816_v19, %s3541_s4 }
 0x5c1   : > { %v1697_v51 = vpop.xlane.xlu0 %1696 }
 0x5c2   : > { %3260 = vrcp.f32 %v1697_v51 }
 0x5c8   : > { %v3261_v31 = vpop.eup %3260 }
 0x5c9   : > { %v1699_v52 = vpop.xlane.xlu0 %1698 }
 0x5ca   : > { %3262 = vrcp.f32 %v1699_v52 }
 0x5cb   : > { %3264 = vrcp.f32 %v1701_v41 }
 0x5cd   : > { %v1769_v40 = vpop.f32.mrf.mxu0 }
 0x5ce   : > { %v1819_v50 = vmul.f32 %v3259_v47, %v1769_v40 }
 0x5d0   : > { %1855 = vrot.lane.b32.xlu2 %v1819_v50, %s3541_s4  ;;  %v3263_v32 = vpop.eup %3262 }
 0x5d1   : > { %v3265_v28 = vpop.eup %3264  ;;  %v1703_v48 = vpop.xlane.xlu0 %1702 }
 0x5d2   : > { %3266 = vrcp.f32 %v1703_v48 }
 0x5d5   : > { %v1771_v23 = vpop.f32.mrf.mxu0 }
 0x5d6   : > { %v1820_v27 = vmul.f32 %v3261_v31, %v1771_v23 }
 0x5d8   : > { %1857 = vrot.lane.b32.xlu0 %v1820_v27, %s3541_s4  ;;  %v3267_v3 = vpop.eup %3266 }
 0x5dd   : > { %v1774_v15 = vpop.f32.mrf.mxu0 }
 0x5de   : > { %v1821_v58 = vmul.f32 %v3263_v32, %v1774_v15 }
 0x5e0   : > { %1859 = vrot.lane.b32.xlu1 %v1821_v58, %s3541_s4 }
 0x5e5   : > { %v1776_v24 = vpop.f32.mrf.mxu0 }
 0x5e6   : > { %v1822_v8 = vmul.f32 %v3265_v28, %v1776_v24  ;;  %v3542_v24 = vmov 64.0  }
 0x5e8   : > { %1861 = vrot.lane.b32.xlu1 %v1822_v8, %s3541_s4 }
 0x5e9   : > { %v1705_v56 = vpop.xlane.xlu1 %1704 }
 0x5ea   : > { %3268 = vrcp.f32 %v1705_v56 }
 0x5ee   : > { %v1848_v25 = vpop.permute.xlu2 %1847 }
 0x5ef   : > { %1896 = vst.msk [vmem:[#allocation2] sm:$0xff] %vm1895_vm2, %v1848_v25 }
 0x5f0   : > { %v3269_v36 = vpop.eup %3268 }
 0x5f5   : > { %v1779_v35 = vpop.f32.mrf.mxu0 }
 0x5f6   : > { %v1823_v29 = vmul.f32 %v3267_v3, %v1779_v35  ;;  %v1852_v59 = vpop.permute.xlu2 %1851  ;;  %v4269_v62 = vld [vmem:[#allocation2] sm:$0xff] }
 0x5f7   : > { %1898 = vst.msk [vmem:[#allocation2 + $0x10] sm:$0xff] %vm1895_vm2, %v1852_v59  ;;  %v1929_v26 = vsel %vm1928_vm3, %v4269_v62, 0.0 }
 0x5f8   : > { %1863 = vrot.lane.b32.xlu0 %v1823_v29, %s3541_s4 }
 0x5f9   : > { %v1707_v55 = vpop.xlane.xlu0 %1706 }
 0x5fa   : > { %3270 = vrcp.f32 %v1707_v55 }
 0x5fd   : > { %v1781_v37 = vpop.f32.mrf.mxu0 }
 0x5fe   : > { %v1824_v2 = vmul.f32 %v3269_v36, %v1781_v37  ;;  %v4271_v20 = vld [vmem:[#allocation2 + $0x10] sm:$0xff] }
 0x5ff   : > { %v1935_v38 = vsel %vm1928_vm3, %v4271_v20, 0.0 }
 0x600   : > { %1865 = vrot.lane.b32.xlu2 %v1824_v2, %s3541_s4  ;;  %v3271_v5 = vpop.eup %3270 }
 0x601   : > { %v1709_v4 = vpop.xlane.xlu0 %1708  ;;  %v1713_v30 = vpop.xlane.xlu1 %1712 }
 0x602   : > { %3272 = vrcp.f32 %v1709_v4 }
 0x605   : > { %v1784_v42 = vpop.f32.mrf.mxu1 }
 0x606   : > { %v1825_v61 = vmul.f32 %v3271_v5, %v1784_v42 }
 0x608   : > { %1867 = vrot.lane.b32.xlu1 %v1825_v61, %s3541_s4  ;;  %v3273_v10 = vpop.eup %3272 }
 0x609   : > { %v1711_v6 = vpop.xlane.xlu0 %1710 }
 0x60a   : > { %3274 = vrcp.f32 %v1711_v6 }
 0x60d   : > { %v1786_v39 = vpop.f32.mrf.mxu1 }
 0x60e   : > { %v1826_v53 = vmul.f32 %v3273_v10, %v1786_v39 }
 0x610   : > { %1869 = vrot.lane.b32.xlu0 %v1826_v53, %s3541_s4  ;;  %v3275_v60 = vpop.eup %3274 }
 0x611   : > { %v1715_v12 = vpop.xlane.xlu0 %1714 }
 0x612   : > { %3276 = vrcp.f32 %v1715_v12 }
 0x613   : > { %3278 = vrcp.f32 %v1713_v30 }
 0x614   : > { %3280 = vrcp.f32 %v3542_v24  ;;  %v3010_v24 = vld [vmem:[%s4773_s25 + $0x30] sm:$0xff] }
 0x615   : > { %v1789_v43 = vpop.f32.mrf.mxu1 }
 0x616   : > { %v1827_v11 = vmul.f32 %v3275_v60, %v1789_v43 }
 0x618   : > { %1871 = vrot.lane.b32.xlu2 %v1827_v11, %s3541_s4  ;;  %v3277_v51 = vpop.eup %3276 }
 0x619   : > { %v1854_v63 = vpop.permute.xlu1 %1853  ;;  %v3279_v52 = vpop.eup %3278 }
 0x61a   : > { %1899 = vst.msk [vmem:[#allocation2 + $0x18] sm:$0xff] %vm1895_vm2, %v1854_v63  ;;  %v3281_v48 = vpop.eup %3280 }
 0x61b   : > { %v1978_v25 = vmul.f32 64.0, %v3281_v48  ;;  %vm1982_vm4 = vweird.f32 %v3281_v48 }
 0x61d   : > { %v1791_v16 = vpop.f32.mrf.mxu1  ;;  %v1979_v56 = vsub.f32 1.0, %v1978_v25 }
 0x61e   : > { %v1828_v23 = vmul.f32 %v3279_v52, %v1791_v16 }
 0x61f   : > { %v1980_v3 = vmul.f32 %v3281_v48, %v1979_v56  ;;  %v2439_v56 = vsel %vm1928_vm3, %v3010_v24, 0 }
 0x621   : > { %v4277_v49 = vld [vmem:[#allocation2 + $0x18] sm:$0xff]  ;;  %v1981_v29 = vadd.f32 %v3281_v48, %v1980_v3 }
 0x622   : > { %v1938_v1 = vsel %vm1928_vm3, %v4277_v49, 0.0 }
 0x623   : > { %v4313_v59 = vsel %vm1982_vm4, %v3281_v48, %v1981_v29 }
 0x624   : > { %v1850_v13 = vpop.permute.xlu0 %1849 }
 0x625   : > { %1897 = vst.msk [vmem:[#allocation2 + $0x8] sm:$0xff] %vm1895_vm2, %v1850_v13 }
 0x62a   : > { %v1856_v46 = vpop.permute.xlu2 %1855 }
 0x62b   : > { %1900 = vst.msk [vmem:[#allocation2 + $0x20] sm:$0xff] %vm1895_vm2, %v1856_v46 }
 0x62c   : > { %v4265_v45 = vld [vmem:[#allocation2 + $0x8] sm:$0xff] }
 0x62d   : > { %v1932_v44 = vsel %vm1928_vm3, %v4265_v45, 0.0 }
 0x632   : > { %v4283_v14 = vld [vmem:[#allocation2 + $0x20] sm:$0xff] }
 0x633   : > { %v1941_v18 = vsel %vm1928_vm3, %v4283_v14, 0.0 }
 0x63a   : > { %1933 = vadd.xlane.f32.xlu0 %v1932_v44 }
 0x641   : > { %1930 = vadd.xlane.f32.xlu2 %v1929_v26 }
 0x642   : > { %1936 = vadd.xlane.f32.xlu0 %v1935_v38 }
 0x649   : > { %1939 = vadd.xlane.f32.xlu2 %v1938_v1 }
 0x64a   : > { %1320 = vadd.xlane.f32.xlu0 %v4093_v7  ;;  %v1858_v0 = vpop.permute.xlu0 %1857  ;;  %v1794_v7 = vpop.f32.mrf.mxu1 }
 0x64b   : > { %1901 = vst.msk [vmem:[#allocation2 + $0x28] sm:$0xff] %vm1895_vm2, %v1858_v0  ;;  %v1829_v47 = vmul.f32 %v3277_v51, %v1794_v7 }
 0x651   : > { %1942 = vadd.xlane.f32.xlu2 %v1941_v18 }
 0x652   : > { %v1860_v54 = vpop.permute.xlu1 %1859  ;;  %v4287_v57 = vld [vmem:[#allocation2 + $0x28] sm:$0xff] }
 0x653   : > { %1902 = vst.msk [vmem:[#allocation2 + $0x30] sm:$0xff] %vm1895_vm2, %v1860_v54  ;;  %v1944_v21 = vsel %vm1928_vm3, %v4287_v57, 0.0 }
 0x654   : > { %1945 = vadd.xlane.f32.xlu1 %v1944_v21 }
 0x65a   : > { %v1866_v19 = vpop.permute.xlu2 %1865  ;;  %v1862_v22 = vpop.permute.xlu1 %1861  ;;  %v4304_v15 = vld [vmem:[#allocation2 + $0x30] sm:$0xff] }
 0x65b   : > { %1905 = vst.msk [vmem:[#allocation2 + $0x48] sm:$0xff] %vm1895_vm2, %v1866_v19  ;;  %v1947_v58 = vsel %vm1928_vm3, %v4304_v15, 0.0 }
 0x65c   : > { %1903 = vst.msk [vmem:[#allocation2 + $0x38] sm:$0xff] %vm1895_vm2, %v1862_v22 }
 0x65e   : > { %1875 = vrot.lane.b32.xlu0 %v1829_v47, %s3541_s4 }
 0x662   : > { %v4309_v28 = vld [vmem:[#allocation2 + $0x48] sm:$0xff] }
 0x663   : > { %v4295_v40 = vld [vmem:[#allocation2 + $0x38] sm:$0xff]  ;;  %v1956_v8 = vsel %vm1928_vm3, %v4309_v28, 0.0 }
 0x664   : > { %v1950_v50 = vsel %vm1928_vm3, %v4295_v40, 0.0 }
 0x665   : > { %1951 = vadd.xlane.f32.xlu2 %v1950_v50 }
 0x66a   : > { %v1864_v31 = vpop.permute.xlu0 %1863 }
 0x66b   : > { %1904 = vst.msk [vmem:[#allocation2 + $0x40] sm:$0xff] %vm1895_vm2, %v1864_v31 }
 0x66d   : > { %1873 = vrot.lane.b32.xlu1 %v1828_v23, %s3541_s4 }
 0x672   : > { %v1872_v27 = vpop.permute.xlu2 %1871  ;;  %v4351_v38 = vld [vmem:[#allocation2 + $0x40] sm:$0xff] }
 0x673   : > { %1908 = vst.msk [vmem:[#allocation2 + $0x60] sm:$0xff] %vm1895_vm2, %v1872_v27  ;;  %v1953_v1 = vsel %vm1928_vm3, %v4351_v38, 0.0 }
 0x67a   : > { %v1868_v41 = vpop.permute.xlu1 %1867 }
 0x67b   : > { %1906 = vst.msk [vmem:[#allocation2 + $0x50] sm:$0xff] %vm1895_vm2, %v1868_v41  ;;  %v3011_v41 = vld [vmem:[%s4772_s14 + $0x38] sm:$0xff]  ;;  %s4774_s14 = sld [smem:[#allocation31_spill]] }
 0x682   : > { %v1870_v32 = vpop.permute.xlu0 %1869  ;;  %v4356_v16 = vld [vmem:[#allocation2 + $0x50] sm:$0xff] }
 0x683   : > { %1907 = vst.msk [vmem:[#allocation2 + $0x58] sm:$0xff] %vm1895_vm2, %v1870_v32  ;;  %v2442_v32 = vsel %vm1928_vm3, %v3011_v41, 0 }
 0x684   : > { %2444 = vmatpush.bf16.xpose.msrb.mxu2 %v2442_v32 }
 0x688   : > { %1948 = vadd.xlane.f32.xlu0 %v1947_v58 }
 0x68a   : > { %v4362_v21 = vld [vmem:[#allocation2 + $0x58] sm:$0xff] }
 0x68b   : > { %v1962_v47 = vsel %vm1928_vm3, %v4362_v21, 0.0 }
 0x68c   : > { %2445 = vmatpush.bf16.xpose.msrb.mxu2 %v2439_v56 }
 0x697   : > { %1322 = vadd.xlane.f32.xlu1 %v4095_v9 }
 0x69f   : > { %1957 = vadd.xlane.f32.xlu1 %v1956_v8 }
 0x6ad   : > { %v1934_v35 = vpop.xlane.xlu0 %1933 }
 0x6ae   : > { %v1985_v2 = vmul.f32 %v4313_v59, %v1934_v35 }
 0x6b0   : > { %v4329_v6 = vsub.f32 %v4265_v45, %v1985_v2 }
 0x6b2   : > { %v2017_v11 = vmul.f32 %v4329_v6, %v4329_v6 }
 0x6b4   : > { %v1931_v55 = vpop.xlane.xlu2 %1930  ;;  %v2035_v12 = vsel %vm1928_vm3, %v2017_v11, 0.0  ;;  %v3007_v11 = vld [vmem:[%s4773_s25 + $0x18] sm:$0xff] }
 0x6b5   : > { %v1984_v9 = vmul.f32 %v4313_v59, %v1931_v55  ;;  %v1937_v36 = vpop.xlane.xlu0 %1936  ;;  %v3009_v55 = vld [vmem:[%s4773_s25 + $0x28] sm:$0xff] }
 0x6b6   : > { %v1986_v37 = vmul.f32 %v4313_v59, %v1937_v36  ;;  %v4409_v36 = vld [vmem:[#allocation2 + $0x60] sm:$0xff] }
 0x6b7   : > { %v4319_v4 = vsub.f32 %v4269_v62, %v1984_v9 }
 0x6b8   : > { %v4322_v5 = vsub.f32 %v4271_v20, %v1986_v37  ;;  %v3008_v37 = vld [vmem:[%s4773_s25 + $0x20] sm:$0xff] }
 0x6b9   : > { %v2016_v42 = vmul.f32 %v4319_v4, %v4319_v4 }
 0x6ba   : > { %v2018_v61 = vmul.f32 %v4322_v5, %v4322_v5 }
 0x6bb   : > { %v2032_v10 = vsel %vm1928_vm3, %v2016_v42, 0.0  ;;  %v1965_v42 = vsel %vm1928_vm3, %v4409_v36, 0.0 }
 0x6bc   : > { %2033 = vadd.xlane.f32.xlu2 %v2032_v10  ;;  %v1940_v39 = vpop.xlane.xlu2 %1939  ;;  %v2038_v53 = vsel %vm1928_vm3, %v2018_v61, 0.0  ;;  %v2433_v61 = vsel %vm1928_vm3, %v3008_v37, 0 }
 0x6bd   : > { %v1987_v30 = vmul.f32 %v4313_v59, %v1940_v39  ;;  %2039 = vadd.xlane.f32.xlu0 %v2038_v53  ;;  %v1321_v60 = vpop.xlane.xlu0 %1320 }
 0x6be   : > { %3282 = vrcp.f32 %v1321_v60 }
 0x6bf   : > { %v4335_v43 = vsub.f32 %v4277_v49, %v1987_v30  ;;  %3284 = vrcp.f32 %v4252_v17 }
 0x6c1   : > { %v2019_v63 = vmul.f32 %v4335_v43, %v4335_v43 }
 0x6c3   : > { %v2041_v13 = vsel %vm1928_vm3, %v2019_v63, 0.0 }
 0x6c4   : > { %v3283_v46 = vpop.eup %3282  ;;  %v1943_v45 = vpop.xlane.xlu2 %1942  ;;  %2036 = vadd.xlane.f32.xlu2 %v2035_v12  ;;  %v2430_v12 = vsel %vm1928_vm3, %v3007_v11, 0 }
 0x6c5   : > { %v1988_v44 = vmul.f32 %v4313_v59, %v1943_v45  ;;  %2042 = vadd.xlane.f32.xlu0 %v2041_v13  ;;  %v1459_v62 = vmul.f32 %v3283_v46, %v4124_v33  ;;  %v1959_v33 = vsel %vm1928_vm3, %v4356_v16, 0.0  ;;  %v3285_v7 = vpop.eup %3284  ;;  %v3005_v46 = vld [vmem:[%s4773_s25 + $0x8] sm:$0xff] }
 0x6c6   : > { %v2424_v45 = vsel %vm1928_vm3, %v3005_v46, 0 }
 0x6c7   : > { %v4346_v20 = vsub.f32 %v4283_v14, %v1988_v44  ;;  %1475 = vst.msk [vmem:[#allocation2 + $0x70] sm:$0xff] %vm1114_vm1, %v1459_v62  ;;  %v1796_v14 = vpop.f32.mrf.mxu1  ;;  %v1946_v18 = vpop.xlane.xlu1 %1945  ;;  %v3004_v44 = vld [vmem:[%s4773_s25] sm:$0xff] }
 0x6c8   : > { %v1830_v22 = vmul.f32 %v3285_v7, %v1796_v14  ;;  %v1989_v58 = vmul.f32 %v4313_v59, %v1946_v18 }
 0x6c9   : > { %v2020_v26 = vmul.f32 %v4346_v20, %v4346_v20 }
 0x6ca   : > { %v4392_v48 = vsub.f32 %v4287_v57, %v1989_v58 }
 0x6cb   : > { %v2044_v49 = vsel %vm1928_vm3, %v2020_v26, 0.0  ;;  %v2421_v26 = vsel %vm1928_vm3, %v3004_v44, 0 }
 0x6cc   : > { %2045 = vadd.xlane.f32.xlu1 %v2044_v49  ;;  %v2021_v29 = vmul.f32 %v4392_v48, %v4392_v48 }
 0x6cd   : > { %1954 = vadd.xlane.f32.xlu0 %v1953_v1 }
 0x6ce   : > { %v2047_v9 = vsel %vm1928_vm3, %v2021_v29, 0.0 }
 0x6d0   : > { %v1876_v0 = vpop.permute.xlu0 %1875 }
 0x6d1   : > { %1910 = vst.msk [vmem:[#allocation2 + $0x70] sm:$0xff] %vm1895_vm2, %v1876_v0 }
 0x6d4   : > { %1960 = vadd.xlane.f32.xlu1 %v1959_v33 }
 0x6d8   : > { %v1952_v54 = vpop.xlane.xlu2 %1951  ;;  %v4379_v23 = vld [vmem:[#allocation2 + $0x70] sm:$0xff] }
 0x6d9   : > { %v1991_v19 = vmul.f32 %v4313_v59, %v1952_v54  ;;  %v1971_v27 = vsel %vm1928_vm3, %v4379_v23, 0.0 }
 0x6db   : > { %v4366_v51 = vsub.f32 %v4295_v40, %v1991_v19 }
 0x6dc   : > { %1963 = vadd.xlane.f32.xlu1 %v1962_v47  ;;  %1877 = vrot.lane.b32.xlu2 %v1830_v22, %s3541_s4 }
 0x6dd   : > { %v2023_v17 = vmul.f32 %v4366_v51, %v4366_v51 }
 0x6df   : > { %v1874_v50 = vpop.permute.xlu1 %1873  ;;  %v2053_v52 = vsel %vm1928_vm3, %v2023_v17, 0.0 }
 0x6e0   : > { %1909 = vst.msk [vmem:[#allocation2 + $0x68] sm:$0xff] %vm1895_vm2, %v1874_v50  ;;  %2054 = vadd.xlane.f32.xlu0 %v2053_v52 }
 0x6e7   : > { %v4375_v31 = vld [vmem:[#allocation2 + $0x68] sm:$0xff] }
 0x6e8   : > { %v1968_v40 = vsel %vm1928_vm3, %v4375_v31, 0.0 }
 0x6e9   : > { %1969 = vadd.xlane.f32.xlu0 %v1968_v40 }
 0x6f1   : > { %1972 = vadd.xlane.f32.xlu0 %v1971_v27 }
 0x6fb   : > { %v1949_v8 = vpop.xlane.xlu0 %1948 }
 0x6fc   : > { %v1990_v25 = vmul.f32 %v4313_v59, %v1949_v8 }
 0x6fe   : > { %v4397_v3 = vsub.f32 %v4304_v15, %v1990_v25  ;;  %v2436_v15 = vsel %vm1928_vm3, %v3009_v55, 0 }
 0x6ff   : > { %2446 = vmatpush.bf16.xpose.msrb.mxu2 %v2436_v15 }
 0x700   : > { %v2022_v35 = vmul.f32 %v4397_v3, %v4397_v3 }
 0x702   : > { %v2050_v57 = vsel %vm1928_vm3, %v2022_v35, 0.0 }
 0x703   : > { %2051 = vadd.xlane.f32.xlu1 %v2050_v57 }
 0x705   : > { %2048 = vadd.xlane.f32.xlu2 %v2047_v9 }
 0x707   : > { %2447 = vmatpush.bf16.xpose.msrb.mxu2 %v2433_v61 }
 0x70a   : > { %v1323_v2 = vpop.xlane.xlu1 %1322 }
 0x70b   : > { %3286 = vrcp.f32 %v1323_v2  ;;  %1966 = vadd.xlane.f32.xlu1 %v1965_v42 }
 0x70f   : > { %2448 = vmatpush.bf16.xpose.msrb.mxu2 %v2430_v12 }
 0x711   : > { %v3287_v10 = vpop.eup %3286 }
 0x712   : > { %v1958_v39 = vpop.xlane.xlu1 %1957  ;;  %v1460_v53 = vmul.f32 %v3287_v10, %v4126_v34  ;;  %v3006_v34 = vld [vmem:[%s4773_s25 + $0x10] sm:$0xff] }
 0x713   : > { %v1993_v30 = vmul.f32 %v4313_v59, %v1958_v39 }
 0x714   : > { %1476 = vst.msk [vmem:[#allocation2 + $0x78] sm:$0xff] %vm1114_vm1, %v1460_v53 }
 0x715   : > { %v4421_v60 = vsub.f32 %v4309_v28, %v1993_v30  ;;  %v2427_v28 = vsel %vm1928_vm3, %v3006_v34, 0 }
 0x717   : > { %v2025_v63 = vmul.f32 %v4421_v60, %v4421_v60  ;;  %2449 = vmatpush.bf16.xpose.msrb.mxu2 %v2427_v28 }
 0x719   : > { %v2059_v13 = vsel %vm1928_vm3, %v2025_v63, 0.0 }
 0x71a   : > { %2060 = vadd.xlane.f32.xlu2 %v2059_v13  ;;  %v4480_v13 = vld [vmem:[%s4774_s14] ss:$0 sm:$0xff]  ;;  %s2523_s14 = scalar_lea.hbm %s4780_s8, %s2947_s19 }
 0x71b   : > { %s2526_s12 = sshll.u32 %s2523_s14, 4  ;;  %s2527_s12 = int_to_ptr.hbm [resolvable:$true] %s2526_s12 }
 0x71c   : > { %s3424_s24 = sshra.s32 %s2527_s12, 4  ;;  %s3425_s24 = int_to_ptr.hbm [resolvable:$true] %s3424_s24 }
 0x71d   : > { %s3426_s27 = scalar_lea.hbm %s3425_s24, 128  ;;  %p3431_p2 = scmp.lt.s32.totalorder %s3425_s24, %s4780_s8 }
 0x71e   : > { %p3427_p5 = scmp.ne.s32.totalorder %s3425_s24, %s3426_s27  ;;  %p3432_p3 = scmp.lt.s32.totalorder %s3430_s10, %s3426_s27 }
 0x71f   : > { %2450 = vmatpush.bf16.xpose.msrb.mxu2 %v2424_v45 }
 0x720   : > { %p3428_p7 = pnand %p3427_p5, %p3733_p8  ;;  %p3433_p4 = por %p3432_p3, %p3431_p2 }
 0x722   : > { %p3429_p10 = pneg %p3428_p7 }
 0x724   : > { %p3434_p9 = pnand %p3433_p4, %p3429_p10 }
 0x727   : > { %2451 = vmatpush.bf16.xpose.msrb.mxu2 %v2421_v26 }
 0x72f   : > { %v2034_v62 = vpop.xlane.xlu2 %2033 }
 0x730   : > { %v2080_v49 = vmul.f32 %v2034_v62, %v4313_v59  ;;  %v2040_v1 = vpop.xlane.xlu0 %2039 }
 0x731   : > { %v2082_v33 = vmul.f32 %v2040_v1, %v4313_v59 }
 0x732   : > { %v2096_v0 = vadd.f32 1e-05, %v2080_v49  ;;  %v4492_v49 = vld [vmem:[%s4775_s6] ss:$0 sm:$0xff]  ;;  %s2510_s6 = scalar_lea.sflag [#allocation7], %s3784_s2 }
 0x733   : > { %v4444_v14 = vadd.f32 1e-05, %v2082_v33 }
 0x734   : > { %3288 = vrsqrt.f32 %v2096_v0  ;;  %vm2118_vm6 = vweird.f32 %v2096_v0 }
 0x735   : > { %3290 = vrsqrt.f32 %v4444_v14  ;;  %vm2138_vm15 = vweird.f32 %v4444_v14 }
 0x737   : > { %v2037_v18 = vpop.xlane.xlu2 %2036 }
 0x738   : > { %v2081_v54 = vmul.f32 %v2037_v18, %v4313_v59  ;;  %v2043_v7 = vpop.xlane.xlu0 %2042 }
 0x739   : > { %v2083_v19 = vmul.f32 %v2043_v7, %v4313_v59 }
 0x73a   : > { %v3289_v22 = vpop.eup %3288  ;;  %v2097_v47 = vadd.f32 1e-05, %v2081_v54 }
 0x73b   : > { %v2113_v17 = vmul.f32 %v3289_v22, %v2096_v0  ;;  %v4449_v50 = vadd.f32 1e-05, %v2083_v19  ;;  %v4454_v32 = vpop.eup %3290  ;;  %vm2119_vm5 = vweird.f32 %v3289_v22 }
 0x73c   : > { %3292 = vrsqrt.f32 %v2097_v47  ;;  %v2133_v29 = vmul.f32 %v4454_v32, %v4444_v14  ;;  %vm2120_vm7 = vmor %vm2118_vm6, %vm2119_vm5  ;;  %vm2128_vm9 = vweird.f32 %v2097_v47  ;;  %vm2139_vm12 = vweird.f32 %v4454_v32 }
 0x73d   : > { %v2114_v52 = vmul.f32 %v3289_v22, %v2113_v17  ;;  %3294 = vrsqrt.f32 %v4449_v50  ;;  %vm2148_vm13 = vweird.f32 %v4449_v50  ;;  %vm2140_vm0 = vmor %vm2138_vm15, %vm2139_vm12 }
 0x73e   : > { %v2134_v61 = vmul.f32 %v4454_v32, %v2133_v29 }
 0x73f   : > { %v2115_v40 = vmul.f32 0.5, %v2114_v52  ;;  %v4452_v27 = vpop.xlane.xlu1 %2045  ;;  %v1878_v41 = vpop.permute.xlu2 %1877 }
 0x740   : > { %1911 = vst.msk [vmem:[#allocation2 + $0x78] sm:$0xff] %vm1895_vm2, %v1878_v41  ;;  %v1955_v58 = vpop.xlane.xlu0 %1954  ;;  %v2135_v34 = vmul.f32 0.5, %v2134_v61 }
 0x741   : > { %v2116_v24 = vsub.f32 1.5, %v2115_v40  ;;  %v1992_v8 = vmul.f32 %v4313_v59, %v1955_v58 }
 0x742   : > { %v3293_v25 = vpop.eup %3292  ;;  %v2136_v1 = vsub.f32 1.5, %v2135_v34 }
 0x743   : > { %v4458_v56 = vpop.eup %3294  ;;  %v2117_v35 = vmul.f32 %v3289_v22, %v2116_v24  ;;  %v2123_v55 = vmul.f32 %v3293_v25, %v2097_v47  ;;  %v4463_v57 = vsub.f32 %v4351_v38, %v1992_v8  ;;  %vm2129_vm8 = vweird.f32 %v3293_v25 }
 0x744   : > { %v2143_v9 = vmul.f32 %v4458_v56, %v4449_v50  ;;  %vm2130_vm10 = vmor %vm2128_vm9, %vm2129_vm8  ;;  %vm2149_vm11 = vweird.f32 %v4458_v56  ;;  %v2137_v47 = vmul.f32 %v4454_v32, %v2136_v1 }
 0x745   : > { %v2124_v15 = vmul.f32 %v3293_v25, %v2123_v55  ;;  %v2024_v37 = vmul.f32 %v4463_v57, %v4463_v57  ;;  %v2121_v42 = vsel %vm2120_vm7, %v3289_v22, %v2117_v35  ;;  %vm2150_vm14 = vmor %vm2148_vm13, %vm2149_vm11 }
 0x746   : > { %v2144_v2 = vmul.f32 %v4458_v56, %v2143_v9  ;;  %v2272_v63 = vmul.f32 %v2121_v42, %v4319_v4  ;;  %v2141_v58 = vsel %vm2140_vm0, %v4454_v32, %v2137_v47 }
 0x747   : > { %v2125_v10 = vmul.f32 0.5, %v2124_v15  ;;  %v1961_v39 = vpop.xlane.xlu1 %1960  ;;  %v2056_v53 = vsel %vm1928_vm3, %v2024_v37, 0.0  ;;  %v4484_v45 = vld [vmem:[#allocation2 + $0x78] sm:$0xff]  ;;  %v2274_v24 = vmul.f32 %v2141_v58, %v4322_v5  ;;  %v2084_v5 = vmul.f32 %v4452_v27, %v4313_v59 }
 0x748   : > { %v1994_v38 = vmul.f32 %v4313_v59, %v1961_v39  ;;  %2057 = vadd.xlane.f32.xlu1 %v2056_v53  ;;  %v2145_v11 = vmul.f32 0.5, %v2144_v2  ;;  %v2292_v26 = vmul.f32 %v4480_v13, %v2272_v63  ;;  %v1974_v33 = vsel %vm1928_vm3, %v4484_v45, 0.0 }
 0x749   : > { %v2126_v30 = vsub.f32 1.5, %v2125_v10  ;;  %v2294_v14 = vmul.f32 %v4480_v13, %v2274_v24 }
 0x74a   : > { %v4475_v12 = vsub.f32 %v4356_v16, %v1994_v38  ;;  %v2146_v62 = vsub.f32 1.5, %v2145_v11  ;;  %v2312_v19 = vadd.f32 %v4492_v49, %v2292_v26 }
 0x74b   : > { %v2127_v28 = vmul.f32 %v3293_v25, %v2126_v30  ;;  %v2314_v55 = vadd.f32 %v4492_v49, %v2294_v14 }
 0x74c   : > { %v2026_v46 = vmul.f32 %v4475_v12, %v4475_v12  ;;  %v2147_v54 = vmul.f32 %v4458_v56, %v2146_v62 }
 0x74d   : > { %v2131_v44 = vsel %vm2130_vm10, %v3293_v25, %v2127_v28 }
 0x74e   : > { %v2273_v4 = vmul.f32 %v2131_v44, %v4329_v6  ;;  %v2062_v16 = vsel %vm1928_vm3, %v2026_v46, 0.0 }
 0x74f   : > { %v1964_v0 = vpop.xlane.xlu1 %1963  ;;  %2063 = vadd.xlane.f32.xlu2 %v2062_v16 }
 0x750   : > { %v1995_v18 = vmul.f32 %v4313_v59, %v1964_v0  ;;  %1975 = vadd.xlane.f32.xlu1 %v1974_v33  ;;  %v2293_v6 = vmul.f32 %v4480_v13, %v2273_v4 }
 0x752   : > { %v4501_v7 = vsub.f32 %v4362_v21, %v1995_v18  ;;  %v2313_v22 = vadd.f32 %v4492_v49, %v2293_v6  ;;  %v2151_v21 = vsel %vm2150_vm14, %v4458_v56, %v2147_v54 }
 0x753   : > { %v2055_v17 = vpop.xlane.xlu0 %2054  ;;  %v2275_v50 = vmul.f32 %v2151_v21, %v4335_v43 }
 0x754   : > { %v2328_v52 = vpack.c.bf16 %v2313_v22, %v2312_v19  ;;  %v2027_v40 = vmul.f32 %v4501_v7, %v4501_v7  ;;  %v2087_v10 = vmul.f32 %v2055_v17, %v4313_v59 }
 0x755   : > { %v2295_v25 = vmul.f32 %v4480_v13, %v2275_v50 }
 0x756   : > { %2936 = vmatmul.msk.bf16.vlgmr.msrb.gmra.mxu2 %vm1928_vm3, %v2328_v52  ;;  %v2065_v41 = vsel %vm1928_vm3, %v2027_v40, 0.0  ;;  %v2103_v53 = vadd.f32 1e-05, %v2087_v10 }
 0x757   : > { %2066 = vadd.xlane.f32.xlu0 %v2065_v41  ;;  %v2315_v29 = vadd.f32 %v4492_v49, %v2295_v25 }
 0x758   : > { %vm2188_vm12 = vweird.f32 %v2103_v53 }
 0x759   : > { %v2329_v15 = vpack.c.bf16 %v2315_v29, %v2314_v55 }
 0x75c   : > { %v1970_v8 = vpop.xlane.xlu0 %1969 }
 0x75d   : > { %v1997_v35 = vmul.f32 %v4313_v59, %v1970_v8 }
 0x75f   : > { %v4521_v56 = vsub.f32 %v4375_v31, %v1997_v35  ;;  %v2100_v31 = vadd.f32 1e-05, %v2084_v5 }
 0x761   : > { %v2029_v32 = vmul.f32 %v4521_v56, %v4521_v56  ;;  %3296 = vrsqrt.f32 %v2100_v31  ;;  %vm2158_vm2 = vweird.f32 %v2100_v31 }
 0x762   : > { %3298 = vrsqrt.f32 %v2103_v53 }
 0x763   : > { %v2071_v43 = vsel %vm1928_vm3, %v2029_v32, 0.0 }
 0x764   : > { %2072 = vadd.xlane.f32.xlu2 %v2071_v43  ;;  %v1973_v9 = vpop.xlane.xlu0 %1972 }
 0x765   : > { %v1998_v37 = vmul.f32 %v4313_v59, %v1973_v9 }
 0x766   : > { %2937 = vmatmul.msk.bf16.gmra.mxu2 %vm1928_vm3, %v2329_v15 }
 0x767   : > { %v4533_v2 = vsub.f32 %v4379_v23, %v1998_v37  ;;  %v3297_v27 = vpop.eup %3296 }
 0x768   : > { %v2153_v39 = vmul.f32 %v3297_v27, %v2100_v31  ;;  %v3299_v4 = vpop.eup %3298  ;;  %vm2159_vm1 = vweird.f32 %v3297_v27 }
 0x769   : > { %v2030_v42 = vmul.f32 %v4533_v2, %v4533_v2  ;;  %v2183_v54 = vmul.f32 %v3299_v4, %v2103_v53  ;;  %vm2160_vm4 = vmor %vm2158_vm2, %vm2159_vm1  ;;  %vm2189_vm9 = vweird.f32 %v3299_v4 }
 0x76a   : > { %v2154_v11 = vmul.f32 %v3297_v27, %v2153_v39  ;;  %vm2190_vm13 = vmor %vm2188_vm12, %vm2189_vm9 }
 0x76b   : > { %v2074_v61 = vsel %vm1928_vm3, %v2030_v42, 0.0  ;;  %v2184_v40 = vmul.f32 %v3299_v4, %v2183_v54 }
 0x76c   : > { %2075 = vadd.xlane.f32.xlu0 %v2074_v61  ;;  %v2155_v46 = vmul.f32 0.5, %v2154_v11 }
 0x76d   : > { %v2185_v50 = vmul.f32 0.5, %v2184_v40 }
 0x76e   : > { %v2156_v16 = vsub.f32 1.5, %v2155_v46 }
 0x76f   : > { %v2186_v29 = vsub.f32 1.5, %v2185_v50 }
 0x770   : > { %v2157_v6 = vmul.f32 %v3297_v27, %v2156_v16 }
 0x772   : > { %v2161_v52 = vsel %vm2160_vm4, %v3297_v27, %v2157_v6 }
 0x773   : > { %v2276_v58 = vmul.f32 %v2161_v52, %v4346_v20  ;;  %v2187_v20 = vmul.f32 %v3299_v4, %v2186_v29 }
 0x775   : > { %v2296_v14 = vmul.f32 %v4480_v13, %v2276_v58 }
 0x776   : > { %v2052_v38 = vpop.xlane.xlu1 %2051 }
 0x777   : > { %v2086_v30 = vmul.f32 %v2052_v38, %v4313_v59  ;;  %v2316_v5 = vadd.f32 %v4492_v49, %v2296_v14 }
 0x778   : > { %v2049_v63 = vpop.xlane.xlu2 %2048 }
 0x779   : > { %v2102_v34 = vadd.f32 1e-05, %v2086_v30  ;;  %v2085_v23 = vmul.f32 %v2049_v63, %v4313_v59 }
 0x77b   : > { %3300 = vrsqrt.f32 %v2102_v34  ;;  %v2101_v28 = vadd.f32 1e-05, %v2085_v23  ;;  %vm2178_vm10 = vweird.f32 %v2102_v34 }
 0x77d   : > { %3302 = vrsqrt.f32 %v2101_v28  ;;  %vm2168_vm6 = vweird.f32 %v2101_v28 }
 0x77e   : > { %v1967_v44 = vpop.xlane.xlu1 %1966 }
 0x77f   : > { %v1996_v62 = vmul.f32 %v4313_v59, %v1967_v44 }
 0x781   : > { %v3301_v26 = vpop.eup %3300  ;;  %v4543_v1 = vsub.f32 %v4409_v36, %v1996_v62 }
 0x782   : > { %v2173_v0 = vmul.f32 %v3301_v26, %v2102_v34  ;;  %vm2179_vm8 = vweird.f32 %v3301_v26 }
 0x783   : > { %v3303_v33 = vpop.eup %3302  ;;  %v2028_v18 = vmul.f32 %v4543_v1, %v4543_v1  ;;  %vm2180_vm11 = vmor %vm2178_vm10, %vm2179_vm8 }
 0x784   : > { %v2163_v19 = vmul.f32 %v3303_v33, %v2101_v28  ;;  %v2174_v47 = vmul.f32 %v3301_v26, %v2173_v0  ;;  %vm2169_vm5 = vweird.f32 %v3303_v33 }
 0x785   : > { %v2068_v22 = vsel %vm1928_vm3, %v2028_v18, 0.0  ;;  %vm2170_vm7 = vmor %vm2168_vm6, %vm2169_vm5 }
 0x786   : > { %v2164_v17 = vmul.f32 %v3303_v33, %v2163_v19  ;;  %2069 = vadd.xlane.f32.xlu1 %v2068_v22  ;;  %v2175_v21 = vmul.f32 0.5, %v2174_v47 }
 0x788   : > { %v2165_v36 = vmul.f32 0.5, %v2164_v17  ;;  %v2176_v8 = vsub.f32 1.5, %v2175_v21 }
 0x78a   : > { %v2166_v41 = vsub.f32 1.5, %v2165_v36  ;;  %v2177_v55 = vmul.f32 %v3301_v26, %v2176_v8 }
 0x78c   : > { %v2167_v24 = vmul.f32 %v3303_v33, %v2166_v41  ;;  %v2181_v15 = vsel %vm2180_vm11, %v3301_v26, %v2177_v55 }
 0x78d   : > { %v2278_v37 = vmul.f32 %v2181_v15, %v4397_v3  ;;  %v2061_v10 = vpop.xlane.xlu2 %2060 }
 0x78e   : > { %v2171_v25 = vsel %vm2170_vm7, %v3303_v33, %v2167_v24  ;;  %v2089_v53 = vmul.f32 %v2061_v10, %v4313_v59 }
 0x78f   : > { %v2277_v35 = vmul.f32 %v2171_v25, %v4392_v48  ;;  %v2191_v48 = vsel %vm2190_vm13, %v3299_v4, %v2187_v20  ;;  %v2298_v42 = vmul.f32 %v4480_v13, %v2278_v37  ;;  %v4581_v20 = vld [vmem:[%s4776_s29] ss:$0 sm:$0xff] }
 0x790   : > { %v2279_v31 = vmul.f32 %v2191_v48, %v4366_v51  ;;  %v2105_v30 = vadd.f32 1e-05, %v2089_v53 }
 0x791   : > { %v2297_v32 = vmul.f32 %v4480_v13, %v2277_v35  ;;  %v2318_v27 = vadd.f32 %v4492_v49, %v2298_v42 }
 0x792   : > { %v2299_v61 = vmul.f32 %v4480_v13, %v2279_v31  ;;  %3304 = vrsqrt.f32 %v2105_v30  ;;  %vm2208_vm15 = vweird.f32 %v2105_v30 }
 0x793   : > { %v2317_v43 = vadd.f32 %v4492_v49, %v2297_v32 }
 0x794   : > { %v2319_v39 = vadd.f32 %v4492_v49, %v2299_v61 }
 0x795   : > { %v2330_v9 = vpack.c.bf16 %v2317_v43, %v2316_v5 }
 0x796   : > { %v2331_v38 = vpack.c.bf16 %v2319_v39, %v2318_v27 }
 0x797   : > { %2938 = vmatmul.msk.bf16.gmra.mxu2 %vm1928_vm3, %v2330_v9 }
 0x798   : > { %v3305_v11 = vpop.eup %3304 }
 0x799   : > { %v2203_v3 = vmul.f32 %v3305_v11, %v2105_v30  ;;  %vm2209_vm14 = vweird.f32 %v3305_v11 }
 0x79a   : > { %vm2210_vm0 = vmor %vm2208_vm15, %vm2209_vm14 }
 0x79b   : > { %v2204_v63 = vmul.f32 %v3305_v11, %v2203_v3 }
 0x79d   : > { %v2205_v23 = vmul.f32 0.5, %v2204_v63 }
 0x79f   : > { %v2206_v46 = vsub.f32 1.5, %v2205_v23 }
 0x7a1   : > { %v2207_v33 = vmul.f32 %v3305_v11, %v2206_v46 }
 0x7a3   : > { %v2211_v22 = vsel %vm2210_vm0, %v3305_v11, %v2207_v33 }
 0x7a7   : > { %2939 = vmatmul.msk.bf16.gmra.mxu2 %vm1928_vm3, %v2331_v38 }
 0x7bb   : > { %v2058_v51 = vpop.xlane.xlu1 %2057 }
 0x7bc   : > { %v2088_v34 = vmul.f32 %v2058_v51, %v4313_v59 }
 0x7be   : > { %v2104_v28 = vadd.f32 1e-05, %v2088_v34 }
 0x7c0   : > { %3306 = vrsqrt.f32 %v2104_v28  ;;  %vm2198_vm2 = vweird.f32 %v2104_v28 }
 0x7c2   : > { %v2064_v44 = vpop.xlane.xlu2 %2063 }
 0x7c3   : > { %v2090_v62 = vmul.f32 %v2064_v44, %v4313_v59  ;;  %v1976_v4 = vpop.xlane.xlu1 %1975 }
 0x7c4   : > { %v1999_v16 = vmul.f32 %v4313_v59, %v1976_v4 }
 0x7c5   : > { %v2106_v26 = vadd.f32 1e-05, %v2090_v62 }
 0x7c6   : > { %v3307_v0 = vpop.eup %3306  ;;  %v4567_v18 = vsub.f32 %v4484_v45, %v1999_v16  ;;  %v2281_v45 = vmul.f32 %v2211_v22, %v4421_v60 }
 0x7c7   : > { %v2193_v6 = vmul.f32 %v3307_v0, %v2104_v28  ;;  %3308 = vrsqrt.f32 %v2106_v26  ;;  %vm2199_vm1 = vweird.f32 %v3307_v0  ;;  %vm2218_vm6 = vweird.f32 %v2106_v26 }
 0x7c8   : > { %v2031_v54 = vmul.f32 %v4567_v18, %v4567_v18  ;;  %vm2200_vm4 = vmor %vm2198_vm2, %vm2199_vm1  ;;  %v2301_v25 = vmul.f32 %v4480_v13, %v2281_v45 }
 0x7c9   : > { %v2194_v19 = vmul.f32 %v3307_v0, %v2193_v6 }
 0x7ca   : > { %v2067_v47 = vpop.xlane.xlu0 %2066  ;;  %v2077_v17 = vsel %vm1928_vm3, %v2031_v54, 0.0  ;;  %v2321_v60 = vadd.f32 %v4492_v49, %v2301_v25 }
 0x7cb   : > { %v2195_v52 = vmul.f32 0.5, %v2194_v19  ;;  %v2091_v40 = vmul.f32 %v2067_v47, %v4313_v59  ;;  %2078 = vadd.xlane.f32.xlu1 %v2077_v17 }
 0x7cd   : > { %v3309_v36 = vpop.eup %3308  ;;  %v2196_v21 = vsub.f32 1.5, %v2195_v52  ;;  %v2107_v41 = vadd.f32 1e-05, %v2091_v40 }
 0x7ce   : > { %v2213_v58 = vmul.f32 %v3309_v36, %v2106_v26  ;;  %vm2219_vm5 = vweird.f32 %v3309_v36 }
 0x7cf   : > { %v2197_v50 = vmul.f32 %v3307_v0, %v2196_v21  ;;  %3310 = vrsqrt.f32 %v2107_v41  ;;  %vm2220_vm7 = vmor %vm2218_vm6, %vm2219_vm5  ;;  %vm2228_vm9 = vweird.f32 %v2107_v41 }
 0x7d0   : > { %v2214_v24 = vmul.f32 %v3309_v36, %v2213_v58 }
 0x7d1   : > { %v2201_v8 = vsel %vm2200_vm4, %v3307_v0, %v2197_v50 }
 0x7d2   : > { %v2280_v35 = vmul.f32 %v2201_v8, %v4463_v57  ;;  %v2215_v14 = vmul.f32 0.5, %v2214_v24 }
 0x7d4   : > { %v2216_v29 = vsub.f32 1.5, %v2215_v14  ;;  %v2300_v32 = vmul.f32 %v4480_v13, %v2280_v35 }
 0x7d5   : > { %v3311_v55 = vpop.eup %3310 }
 0x7d6   : > { %v2217_v5 = vmul.f32 %v3309_v36, %v2216_v29  ;;  %v2223_v43 = vmul.f32 %v3311_v55, %v2107_v41  ;;  %v2320_v9 = vadd.f32 %v4492_v49, %v2300_v32  ;;  %vm2229_vm8 = vweird.f32 %v3311_v55 }
 0x7d7   : > { %vm2230_vm10 = vmor %vm2228_vm9, %vm2229_vm8  ;;  %v2073_v38 = vpop.xlane.xlu2 %2072 }
 0x7d8   : > { %v2224_v57 = vmul.f32 %v3311_v55, %v2223_v43  ;;  %v2332_v15 = vpack.c.bf16 %v2321_v60, %v2320_v9  ;;  %v2221_v37 = vsel %vm2220_vm7, %v3309_v36, %v2217_v5  ;;  %v2093_v51 = vmul.f32 %v2073_v38, %v4313_v59 }
 0x7d9   : > { %v2453_v48 = vpop.f32.mrf.mxu2  ;;  %v2282_v27 = vmul.f32 %v2221_v37, %v4475_v12 }
 0x7da   : > { %v2225_v31 = vmul.f32 0.5, %v2224_v57  ;;  %v2454_v42 = vadd.f32 %v4581_v20, %v2453_v48  ;;  %2940 = vmatmul.msk.bf16.gmra.mxu2 %vm1928_vm3, %v2332_v15  ;;  %v2109_v28 = vadd.f32 1e-05, %v2093_v51 }
 0x7db   : > { %v2302_v11 = vmul.f32 %v4480_v13, %v2282_v27 }
 0x7dc   : > { %v2226_v61 = vsub.f32 1.5, %v2225_v31  ;;  %2493 = vst [vmem:[%s3805_s11] sm:$0xff] %v2454_v42  ;;  %3312 = vrsqrt.f32 %v2109_v28  ;;  %vm2248_vm12 = vweird.f32 %v2109_v28 }
 0x7dd   : > { %v2322_v12 = vadd.f32 %v4492_v49, %v2302_v11 }
 0x7de   : > { %v2227_v10 = vmul.f32 %v3311_v55, %v2226_v61 }
 0x7e0   : > { %v2231_v39 = vsel %vm2230_vm10, %v3311_v55, %v2227_v10  ;;  %v2076_v55 = vpop.xlane.xlu0 %2075 }
 0x7e1   : > { %v2283_v53 = vmul.f32 %v2231_v39, %v4501_v7  ;;  %v2455_v30 = vpop.f32.mrf.mxu2  ;;  %v2094_v60 = vmul.f32 %v2076_v55, %v4313_v59 }
 0x7e2   : > { %v2456_v3 = vadd.f32 %v4581_v20, %v2455_v30  ;;  %v3313_v62 = vpop.eup %3312 }
 0x7e3   : > { %v2303_v63 = vmul.f32 %v4480_v13, %v2283_v53  ;;  %v2243_v16 = vmul.f32 %v3313_v62, %v2109_v28  ;;  %vm2249_vm11 = vweird.f32 %v3313_v62  ;;  %v2110_v9 = vadd.f32 1e-05, %v2094_v60 }
 0x7e4   : > { %2494 = vst [vmem:[%s3805_s11 + $0x8] sm:$0xff] %v2456_v3  ;;  %vm2250_vm13 = vmor %vm2248_vm12, %vm2249_vm11 }
 0x7e5   : > { %v2323_v34 = vadd.f32 %v4492_v49, %v2303_v63  ;;  %v2244_v26 = vmul.f32 %v3313_v62, %v2243_v16  ;;  %vm2258_vm2 = vweird.f32 %v2110_v9 }
 0x7e7   : > { %v2333_v23 = vpack.c.bf16 %v2323_v34, %v2322_v12  ;;  %v2245_v54 = vmul.f32 0.5, %v2244_v26 }
 0x7e9   : > { %v2458_v7 = vpop.f32.mrf.mxu2  ;;  %v2246_v19 = vsub.f32 1.5, %v2245_v54 }
 0x7ea   : > { %v2459_v46 = vadd.f32 %v4581_v20, %v2458_v7  ;;  %2941 = vmatmul.msk.bf16.gmra.mxu2 %vm1928_vm3, %v2333_v23 }
 0x7eb   : > { %v2247_v47 = vmul.f32 %v3313_v62, %v2246_v19 }
 0x7ec   : > { %2495 = vst [vmem:[%s3805_s11 + $0x10] sm:$0xff] %v2459_v46 }
 0x7ed   : > { %v2251_v40 = vsel %vm2250_vm13, %v3313_v62, %v2247_v47 }
 0x7ee   : > { %v2285_v21 = vmul.f32 %v2251_v40, %v4521_v56 }
 0x7f0   : > { %v2305_v24 = vmul.f32 %v4480_v13, %v2285_v21 }
 0x7f1   : > { %v2460_v44 = vpop.f32.mrf.mxu2 }
 0x7f2   : > { %v2461_v4 = vadd.f32 %v4581_v20, %v2460_v44  ;;  %v2325_v35 = vadd.f32 %v4492_v49, %v2305_v24 }
 0x7f4   : > { %2496 = vst [vmem:[%s3805_s11 + $0x18] sm:$0xff] %v2461_v4 }
 0x7f9   : > { %v2070_v0 = vpop.xlane.xlu1 %2069 }
 0x7fa   : > { %v2092_v33 = vmul.f32 %v2070_v0, %v4313_v59 }
 0x7fc   : > { %v2108_v6 = vadd.f32 1e-05, %v2092_v33 }
 0x7fe   : > { %3314 = vrsqrt.f32 %v2108_v6  ;;  %vm2238_vm15 = vweird.f32 %v2108_v6 }
 0x7ff   : > { %3316 = vrsqrt.f32 %v2110_v9 }
 0x804   : > { %v3315_v22 = vpop.eup %3314 }
 0x805   : > { %v2233_v17 = vmul.f32 %v3315_v22, %v2108_v6  ;;  %vm2239_vm14 = vweird.f32 %v3315_v22  ;;  %v3317_v48 = vpop.eup %3316 }
 0x806   : > { %vm2240_vm0 = vmor %vm2238_vm15, %vm2239_vm14  ;;  %v2253_v37 = vmul.f32 %v3317_v48, %v2110_v9  ;;  %vm2259_vm1 = vweird.f32 %v3317_v48 }
 0x807   : > { %v2234_v52 = vmul.f32 %v3315_v22, %v2233_v17  ;;  %vm2260_vm4 = vmor %vm2258_vm2, %vm2259_vm1 }
 0x808   : > { %v2254_v31 = vmul.f32 %v3317_v48, %v2253_v37 }
 0x809   : > { %v2235_v36 = vmul.f32 0.5, %v2234_v52 }
 0x80a   : > { %v2255_v10 = vmul.f32 0.5, %v2254_v31 }
 0x80b   : > { %v2236_v45 = vsub.f32 1.5, %v2235_v36 }
 0x80c   : > { %v2256_v39 = vsub.f32 1.5, %v2255_v10 }
 0x80d   : > { %v2237_v41 = vmul.f32 %v3315_v22, %v2236_v45 }
 0x80e   : > { %v2257_v38 = vmul.f32 %v3317_v48, %v2256_v39 }
 0x80f   : > { %v2241_v58 = vsel %vm2240_vm0, %v3315_v22, %v2237_v41 }
 0x810   : > { %v2284_v50 = vmul.f32 %v2241_v58, %v4543_v1  ;;  %v2261_v3 = vsel %vm2260_vm4, %v3317_v48, %v2257_v38 }
 0x811   : > { %v2286_v12 = vmul.f32 %v2261_v3, %v4533_v2 }
 0x812   : > { %v2304_v8 = vmul.f32 %v4480_v13, %v2284_v50 }
 0x813   : > { %v2306_v28 = vmul.f32 %v4480_v13, %v2286_v12 }
 0x814   : > { %v2324_v25 = vadd.f32 %v4492_v49, %v2304_v8 }
 0x815   : > { %v2326_v46 = vadd.f32 %v4492_v49, %v2306_v28 }
 0x816   : > { %v2334_v14 = vpack.c.bf16 %v2325_v35, %v2324_v25 }
 0x818   : > { %2942 = vmatmul.msk.bf16.gmra.mxu2 %vm1928_vm3, %v2334_v14 }
 0x81a   : > { %v2463_v56 = vpop.f32.mrf.mxu2 }
 0x81b   : > { %v2464_v29 = vadd.f32 %v4581_v20, %v2463_v56 }
 0x81d   : > { %2497 = vst [vmem:[%s3805_s11 + $0x20] sm:$0xff] %v2464_v29 }
 0x822   : > { %v2465_v32 = vpop.f32.mrf.mxu2 }
 0x823   : > { %v2466_v1 = vadd.f32 %v4581_v20, %v2465_v32 }
 0x825   : > { %2498 = vst [vmem:[%s3805_s11 + $0x28] sm:$0xff] %v2466_v1 }
 0x82a   : > { %v2468_v5 = vpop.f32.mrf.mxu2 }
 0x82b   : > { %v2469_v43 = vadd.f32 %v4581_v20, %v2468_v5 }
 0x82d   : > { %2499 = vst [vmem:[%s3805_s11 + $0x30] sm:$0xff] %v2469_v43 }
 0x832   : > { %v2470_v57 = vpop.f32.mrf.mxu2 }
 0x833   : > { %v2471_v15 = vadd.f32 %v4581_v20, %v2470_v57 }
 0x835   : > { %2500 = vst [vmem:[%s3805_s11 + $0x38] sm:$0xff] %v2471_v15 }
 0x83e   : > { %v2079_v42 = vpop.xlane.xlu1 %2078 }
 0x83f   : > { %v2095_v61 = vmul.f32 %v2079_v42, %v4313_v59 }
 0x841   : > { %v2111_v27 = vadd.f32 1e-05, %v2095_v61 }
 0x843   : > { %3318 = vrsqrt.f32 %v2111_v27  ;;  %vm2268_vm6 = vweird.f32 %v2111_v27 }
 0x849   : > { %v3319_v53 = vpop.eup %3318 }
 0x84a   : > { %v2263_v30 = vmul.f32 %v3319_v53, %v2111_v27  ;;  %vm2269_vm5 = vweird.f32 %v3319_v53 }
 0x84b   : > { %vm2270_vm7 = vmor %vm2268_vm6, %vm2269_vm5 }
 0x84c   : > { %v2264_v11 = vmul.f32 %v3319_v53, %v2263_v30 }
 0x84e   : > { %v2265_v63 = vmul.f32 0.5, %v2264_v11 }
 0x850   : > { %v2266_v51 = vsub.f32 1.5, %v2265_v63 }
 0x852   : > { %v2267_v34 = vmul.f32 %v3319_v53, %v2266_v51 }
 0x854   : > { %v2271_v59 = vsel %vm2270_vm7, %v3319_v53, %v2267_v34 }
 0x855   : > { %v2287_v23 = vmul.f32 %v2271_v59, %v4567_v18 }
 0x857   : > { %v2307_v7 = vmul.f32 %v4480_v13, %v2287_v23 }
 0x859   : > { %v2327_v44 = vadd.f32 %v4492_v49, %v2307_v7 }
 0x85b   : > { %v2335_v62 = vpack.c.bf16 %v2327_v44, %v2326_v46 }
 0x85d   : > { %v2473_v2 = vpop.f32.mrf.mxu2  ;;  %2943 = vmatmul.msk.bf16.gmra.mxu2 %vm1928_vm3, %v2335_v62 }
 0x85e   : > { %v2474_v4 = vadd.f32 %v4581_v20, %v2473_v2 }
 0x860   : > { %2501 = vst [vmem:[%s3805_s11 + $0x40] sm:$0xff] %v2474_v4 }
 0x865   : > { %v2475_v18 = vpop.f32.mrf.mxu2 }
 0x866   : > { %v2476_v16 = vadd.f32 %v4581_v20, %v2475_v18 }
 0x868   : > { %2502 = vst [vmem:[%s3805_s11 + $0x48] sm:$0xff] %v2476_v16 }
 0x86d   : > { %v2478_v13 = vpop.f32.mrf.mxu2 }
 0x86e   : > { %v2479_v26 = vadd.f32 %v4581_v20, %v2478_v13 }
 0x870   : > { %2503 = vst [vmem:[%s3805_s11 + $0x50] sm:$0xff] %v2479_v26 }
 0x875   : > { %v2480_v49 = vpop.f32.mrf.mxu2 }
 0x876   : > { %v2481_v0 = vadd.f32 %v4581_v20, %v2480_v49 }
 0x878   : > { %2504 = vst [vmem:[%s3805_s11 + $0x58] sm:$0xff] %v2481_v0 }
 0x89b   : > { %v2483_v33 = vpop.f32.mrf.mxu2 }
 0x89c   : > { %v2484_v6 = vadd.f32 %v4581_v20, %v2483_v33 }
 0x89e   : > { %2505 = vst [vmem:[%s3805_s11 + $0x60] sm:$0xff] %v2484_v6 }
 0x8a3   : > { %v2485_v54 = vpop.f32.mrf.mxu2 }
 0x8a4   : > { %v2486_v19 = vadd.f32 %v4581_v20, %v2485_v54 }
 0x8a6   : > { %2506 = vst [vmem:[%s3805_s11 + $0x68] sm:$0xff] %v2486_v19 }
 0x8e0   : > { %v2488_v22 = vpop.f32.mrf.mxu2 }
 0x8e1   : > { %v2489_v47 = vadd.f32 %v4581_v20, %v2488_v22 }
 0x8e3   : > { %2507 = vst [vmem:[%s3805_s11 + $0x70] sm:$0xff] %v2489_v47 }
 0x8e8   : > { %v2490_v17 = vpop.f32.mrf.mxu2 }
 0x8e9   : > { %v2491_v52 = vadd.f32 %v4581_v20, %v2490_v17 }
 0x8eb   : > { %2508 = vst [vmem:[%s3805_s11 + $0x78] sm:$0xff] %v2491_v52 }
 0x8ec   : > { %3437 = shalt.err (!%p3434_p9)
}
 0x8ed   : > { %s3543_s2 = smov 128   ;;  %s3544_s11 = smov 8  }
 0x8ee   : > { %3042 = dma.vmem_to_hbm [thread:$0]  (%p3733_p8), %s2525_s20, 2048, %s2527_s12, %s2510_s6, %s3543_s2, %s3543_s2, %s3544_s11  }
 0x8ef PF: > { %s4781_s5 = sld [smem:[#allocation16_spill]]  ;;  %p3059_p1 = scmp.ge.s32.totalorder %s3536_s23, 2 }
 0x8f1   : > { %p3055_p13 = pnand %p3059_p1, %p3739_p11 }
 0x8f3   : > { %p3056_p0 = pneg %p3055_p13 }
 0x8f5   : > { %s2541_s4 = sand.u32 1, %s4781_s5  }
 0x8f6   : > { %s2542_s7 = scalar_lea.sflag [#allocation7], %s2541_s4 }
 0x8f7   : > { %3491 = dma.done.wait (%p3056_p0), %s2542_s7, 2048  }
 0x8f8   : > { %3493 = vsyncadd (%p3056_p0), %s2542_s7, 4294965248  ;;  %s29_s23 = sadd.s32 1, %s3536_s23   ;;  %s4783_s14 = sld [smem:[#allocation15_spill]] }
 0x8f9   : > { %p26_p12 = scmp.ge.s32.totalorder %s29_s23, 6   ;;  %s4784_s24 = sld [smem:[#allocation25_spill]] }
 0x8fa   : > { %s4785_s28 = smov %s3758_s13  ;;  %s4786_s12 = sld [smem:[#allocation21_spill]] }
 0x8fb   : > { %s4787_s6 = sld [smem:[#allocation23_spill]]  ;;  %s4791_s16 = smov %s3512_s17 }
 0x8fc   : > { %s4792_s17 = smov %s3516_s18  ;;  %s4793_s18 = smov %s4785_s28 }
 0x8fd   : > { %s4794_s19 = smov %s3528_s21  ;;  %s4795_s20 = smov %s3532_s22 }
 0x8fe   : > { %s4788_s13 = smov %s4783_s14  ;;  %s4789_s14 = smov %s3504_s15 }
 0x8ff   : > { %s4790_s15 = smov %s4784_s24  ;;  %28 = sbr.rel (!%p26_p12) target bundleno = 22 (0x16), region = 133 }
 0x900   : > { %s4796_s21 = smov %s4786_s12 }
 0x901   : > { %s4797_s22 = smov %s4787_s6 }
 0x904   :  { %2548 = vsyncpa [#allocation6], 1 }
 0x905   :  { %2550 = vsyncpa [#allocation6 + $0x1], 1 }
 0x906   :  { %2551 = vsyncpa [#allocation9], 1 }
 0x907   :  { %2553 = vsyncpa [#allocation9 + $0x1], 1 }
 0x908   :  { %2554 = vsyncpa [#allocation7], 1 }
 0x909   :  { %2556 = vsyncpa [#allocation7 + $0x1], 1 }

</bundles_post_ra>
